<compile_context>
chip_gen: v7x
topology: tpu7x:2x2x1
jax: 0.10.0
libtpu: 0.0.40
codegen_flags: <defaults>
</compile_context>

<pallas_src>
import functools

import jax
import jax.numpy as jnp
from jax.experimental import pallas as pl
from jax.experimental.pallas import tpu as pltpu

HIDDEN = 400          # fixed by the PyTorch module: nn.Linear(input_dim, 400)
LANE = 128
SUBLANE = 8


def _round_up(n, m):
    return (n + m - 1) // m * m


def enc_kernel(x_ref, w1_ref, b1_ref, w2_ref, b2_ref, out_ref):
    # First linear: cast the x tile to bf16 in VMEM (x stays f32 in HBM), bf16 MXU
    # matmul with f32 accumulation, then f32 bias + ReLU on the VPU.
    h = jnp.dot(x_ref[...].astype(jnp.bfloat16), w1_ref[...],
                preferred_element_type=jnp.float32)
    h = jnp.maximum(h + b1_ref[...], 0.0)
    # Second linear: tiny (K=512, N=128); keep h and W2 in f32 for fidelity of
    # z_logvar (review's correctness concern) — a handful of extra MXU passes.
    out = jnp.dot(h, w2_ref[...], preferred_element_type=jnp.float32)
    out_ref[...] = (out + b2_ref[...]).astype(out_ref.dtype)
    # TODO(synk): optionally fuse the downstream reparameterization
    # (z = mu + eps * exp(0.5 * logvar)) here via pltpu.prng_seed/prng_random_bits;
    # left out to keep the module's forward semantics (returns (z_mu, z_logvar)).


def pack_params(w1, b1, w2, b2):
    """Pad params to lane-friendly shapes.

    w1: (input_dim, HIDDEN) f32   b1: (HIDDEN,) f32
    w2: (HIDDEN, 2*latent_dim) f32   b2: (2*latent_dim,) f32
    (Weights are stored pre-transposed, i.e. (in_features, out_features).)
    Only W1 is cast to bf16 (dominant HBM traffic); W2/biases stay f32.
    """
    input_dim, hidden = w1.shape
    assert hidden == HIDDEN
    two_l = w2.shape[1]

    h_pad = _round_up(HIDDEN, LANE)      # 400 -> 512: dense vregs / MXU passes
    o_pad = _round_up(two_l, LANE)       # 2L  -> 128: unmasked lane-dense output store

    w1p = jnp.zeros((input_dim, h_pad), jnp.float32).at[:, :HIDDEN].set(w1)
    b1p = jnp.zeros((1, h_pad), jnp.float32).at[0, :HIDDEN].set(b1)
    w2p = jnp.zeros((h_pad, o_pad), jnp.float32).at[:HIDDEN, :two_l].set(w2)
    b2p = jnp.zeros((1, o_pad), jnp.float32).at[0, :two_l].set(b2)

    return (w1p.astype(jnp.bfloat16), b1p, w2p, b2p, two_l)


def _pick_batch_tile(B, max_tile=512):
    """v5e/v6e: 1 TensorCore -> one grid step (steps are pure overhead).
    v7x: 2 TensorCores -> even 2-way batch split so both cores get work.
    max_tile keeps the per-step VMEM footprint comfortably inside every
    generation's scoped-VMEM default (16 MiB v5e / 32 MiB v6e & v7x)."""
    try:
        kind = jax.devices()[0].device_kind.lower()
    except Exception:
        kind = ""
    n_tc = 2 if "v7" in kind else 1
    tb = _round_up(pl.cdiv(B, n_tc), SUBLANE)
    return max(SUBLANE, min(tb, max_tile))


@functools.partial(jax.jit, static_argnames=("two_l", "batch_tile"))
def _enc_forward_jit(x, w1p, b1p, w2p, b2p, *, two_l, batch_tile):
    B, input_dim = x.shape
    h_pad = w1p.shape[1]
    o_pad = w2p.shape[1]
    tb = batch_tile

    grid = (pl.cdiv(B, tb),)
    flops = 2 * B * (input_dim * h_pad + h_pad * o_pad)
    bytes_accessed = (x.size * 4 + w1p.size * 2 + w2p.size * 4
                      + b1p.size * 4 + b2p.size * 4 + B * o_pad * 4)

    out = pl.pallas_call(
        enc_kernel,
        out_shape=jax.ShapeDtypeStruct((B, o_pad), jnp.float32),
        grid_spec=pltpu.PrefetchScalarGridSpec(
            num_scalar_prefetch=0,
            grid=grid,
            in_specs=[
                # x tile: ragged last batch block is fine; feature dim is the
                # full array dim (need not be a multiple of 128).
                pl.BlockSpec((tb, input_dim), lambda i: (i, 0)),
                pl.BlockSpec((input_dim, h_pad), lambda i: (0, 0)),  # W1 bf16, VMEM-resident
                pl.BlockSpec((1, h_pad), lambda i: (0, 0)),          # b1
                pl.BlockSpec((h_pad, o_pad), lambda i: (0, 0)),      # W2 f32, VMEM-resident
                pl.BlockSpec((1, o_pad), lambda i: (0, 0)),          # b2
            ],
            out_specs=pl.BlockSpec((tb, o_pad), lambda i: (i, 0)),
        ),
        compiler_params=pltpu.CompilerParams(
            dimension_semantics=("parallel",)),                      # v7x: 2 TCs split batch
        cost_estimate=pl.CostEstimate(
            flops=flops, transcendentals=0, bytes_accessed=bytes_accessed),
    )(x, w1p, b1p, w2p, b2p)

    latent = two_l // 2
    return out[:, :latent], out[:, latent:two_l]


def enc_forward(x, w1p, b1p, w2p, b2p, *, two_l, batch_tile=None):
    """x: (B, input_dim) f32. Returns (z_mu, z_logvar), each (B, latent_dim) f32."""
    if batch_tile is None:
        batch_tile = _pick_batch_tile(x.shape[0])
    return _enc_forward_jit(x, w1p, b1p, w2p, b2p,
                            two_l=two_l, batch_tile=int(batch_tile))


def init_params(key, input_dim, latent_dim):
    """Deterministic synthetic params matching nn.Linear(input_dim, 400) and
    nn.Linear(400, 2*latent_dim), stored transposed ((in, out)) for the kernel."""
    k1, k2, k3, k4 = jax.random.split(key, 4)
    s1 = 1.0 / jnp.sqrt(input_dim)
    s2 = 1.0 / jnp.sqrt(HIDDEN)
    w1 = jax.random.uniform(k1, (input_dim, HIDDEN), jnp.float32, -s1, s1)
    b1 = jax.random.uniform(k2, (HIDDEN,), jnp.float32, -s1, s1)
    w2 = jax.random.uniform(k3, (HIDDEN, 2 * latent_dim), jnp.float32, -s2, s2)
    b2 = jax.random.uniform(k4, (2 * latent_dim,), jnp.float32, -s2, s2)
    return w1, b1, w2, b2


if __name__ == "__main__":
    key = jax.random.PRNGKey(0)
    kx, kp = jax.random.split(key)

    # Rotated-MNIST-like sizes, small batch; B chosen so a forced small tile
    # also exercises the ragged boundary-block path.
    B, input_dim, latent_dim = 200, 784, 10
    x = jax.random.normal(kx, (B, input_dim), jnp.float32)
    w1, b1, w2, b2 = init_params(kp, input_dim, latent_dim)

    w1p, b1p, w2p, b2p, two_l = pack_params(w1, b1, w2, b2)

    # Auto-picked tile (one step on v5e/v6e, 2-way split on v7x).
    z_mu, z_logvar = enc_forward(x, w1p, b1p, w2p, b2p, two_l=two_l)
    jax.block_until_ready((z_mu, z_logvar))
    assert z_mu.shape == (B, latent_dim) and z_logvar.shape == (B, latent_dim)

    # Forced small tile: multi-step grid + ragged last batch block (200 = 3*64 + 8).
    z_mu2, z_logvar2 = enc_forward(x, w1p, b1p, w2p, b2p, two_l=two_l, batch_tile=64)
    jax.block_until_ready((z_mu2, z_logvar2))
    assert jnp.allclose(z_mu, z_mu2, atol=1e-5, rtol=1e-5)
    assert jnp.allclose(z_logvar, z_logvar2, atol=1e-5, rtol=1e-5)

    # Reference with the same bf16-rounded x/W1 operands (f32 elsewhere) — tight check.
    xb = x.astype(jnp.bfloat16).astype(jnp.float32)
    w1b = w1.astype(jnp.bfloat16).astype(jnp.float32)
    h_ref = jnp.maximum(xb @ w1b + b1, 0.0)
    out_ref = h_ref @ w2 + b2
    mu_ref, lv_ref = out_ref[:, :latent_dim], out_ref[:, latent_dim:]
    assert jnp.allclose(z_mu, mu_ref, atol=1e-2, rtol=1e-2)
    assert jnp.allclose(z_logvar, lv_ref, atol=1e-2, rtol=1e-2)

    # Full-f32 reference — loose check (bf16 W1/x intentionally change numerics).
    h32 = jnp.maximum(x @ w1 + b1, 0.0)
    out32 = h32 @ w2 + b2
    assert jnp.allclose(z_mu, out32[:, :latent_dim], atol=5e-2, rtol=5e-2)
    assert jnp.allclose(z_logvar, out32[:, latent_dim:], atol=5e-2, rtol=5e-2)

    print("KERNEL_OK")
</pallas_src>

<mosaic_0001>
module attributes {stable_mosaic.version = 11 : i64} {
  func.func @enc_kernel(%arg0: i32, %arg1: memref<200x784xf32, #tpu.memory_space<vmem>>, %arg2: memref<784x512xbf16, #tpu.memory_space<vmem>>, %arg3: memref<1x512xf32, #tpu.memory_space<vmem>>, %arg4: memref<512x128xf32, #tpu.memory_space<vmem>>, %arg5: memref<1x128xf32, #tpu.memory_space<vmem>>, %arg6: memref<200x128xf32, #tpu.memory_space<vmem>>) attributes {dimension_semantics = [#tpu.dimension_semantics<parallel>], iteration_bounds = array<i64: 1>, scalar_prefetch = 0 : i64, scratch_operands = 0 : i64, tpu.core_type = #tpu.core_type<tc>, window_params = [{transform_indices = @transform_0, window_bounds = array<i64: 200, 784>}, {pipeline_mode = #tpu.pipeline_mode<synchronous>, transform_indices = @transform_1, window_bounds = array<i64: 784, 512>}, {pipeline_mode = #tpu.pipeline_mode<synchronous>, transform_indices = @transform_2, window_bounds = array<i64: 1, 512>}, {pipeline_mode = #tpu.pipeline_mode<synchronous>, transform_indices = @transform_3, window_bounds = array<i64: 512, 128>}, {pipeline_mode = #tpu.pipeline_mode<synchronous>, transform_indices = @transform_4, window_bounds = array<i64: 1, 128>}, {transform_indices = @transform_5, window_bounds = array<i64: 200, 128>}]} {
    %c0 = arith.constant 0 : index
    %c0_0 = arith.constant 0 : index
    %0 = vector.load %arg1[%c0, %c0_0] : memref<200x784xf32, #tpu.memory_space<vmem>>, vector<200x784xf32>
    %1 = arith.truncf %0 : vector<200x784xf32> to vector<200x784xbf16>
    %c0_1 = arith.constant 0 : index
    %c0_2 = arith.constant 0 : index
    %2 = vector.load %arg2[%c0_1, %c0_2] : memref<784x512xbf16, #tpu.memory_space<vmem>>, vector<784x512xbf16>
    %cst = arith.constant dense<0.000000e+00> : vector<200x512xf32>
    %3 = tpu.matmul %1, %2, %cst {dimension_numbers = #tpu.dot_dimension_numbers<[1], [0], [0], [1], [0, 0, 1, 1], [], []>} : vector<200x784xbf16>, vector<784x512xbf16>, vector<200x512xf32> -> vector<200x512xf32>
    %c0_3 = arith.constant 0 : index
    %c0_4 = arith.constant 0 : index
    %4 = vector.load %arg3[%c0_3, %c0_4] : memref<1x512xf32, #tpu.memory_space<vmem>>, vector<1x512xf32>
    %5 = vector.broadcast %4 : vector<1x512xf32> to vector<200x512xf32>
    %6 = arith.addf %3, %5 : vector<200x512xf32>
    %cst_5 = arith.constant 0.000000e+00 : f32
    %7 = vector.broadcast %cst_5 : f32 to vector<200x512xf32>
    %8 = arith.maximumf %6, %7 : vector<200x512xf32>
    %c0_6 = arith.constant 0 : index
    %c0_7 = arith.constant 0 : index
    %9 = vector.load %arg4[%c0_6, %c0_7] : memref<512x128xf32, #tpu.memory_space<vmem>>, vector<512x128xf32>
    %cst_8 = arith.constant dense<0.000000e+00> : vector<200x128xf32>
    %10 = tpu.matmul %8, %9, %cst_8 {dimension_numbers = #tpu.dot_dimension_numbers<[1], [0], [0], [1], [0, 0, 1, 1], [], []>} : vector<200x512xf32>, vector<512x128xf32>, vector<200x128xf32> -> vector<200x128xf32>
    %c0_9 = arith.constant 0 : index
    %c0_10 = arith.constant 0 : index
    %11 = vector.load %arg5[%c0_9, %c0_10] : memref<1x128xf32, #tpu.memory_space<vmem>>, vector<1x128xf32>
    %12 = vector.broadcast %11 : vector<1x128xf32> to vector<200x128xf32>
    %13 = arith.addf %10, %12 : vector<200x128xf32>
    %c0_11 = arith.constant 0 : index
    %c0_12 = arith.constant 0 : index
    %14 = vector.load %arg6[%c0_11, %c0_12] : memref<200x128xf32, #tpu.memory_space<vmem>>, vector<200x128xf32>
    tpu.vector_store %arg6[%c0_11, %c0_12], %13 {strides = array<i32>} : memref<200x128xf32, #tpu.memory_space<vmem>>, vector<200x128xf32>,
    return
  }
  func.func @transform_0(%arg0: i32) -> (i32, i32) {
    %c0_i32 = arith.constant 0 : i32
    %c0_i32_0 = arith.constant 0 : i32
    return %arg0, %c0_i32 : i32, i32
  }
  func.func @transform_1(%arg0: i32) -> (i32, i32) {
    %c0_i32 = arith.constant 0 : i32
    %c0_i32_0 = arith.constant 0 : i32
    %c0_i32_1 = arith.constant 0 : i32
    return %c0_i32, %c0_i32_0 : i32, i32
  }
  func.func @transform_2(%arg0: i32) -> (i32, i32) {
    %c0_i32 = arith.constant 0 : i32
    %c0_i32_0 = arith.constant 0 : i32
    %c0_i32_1 = arith.constant 0 : i32
    return %c0_i32, %c0_i32_0 : i32, i32
  }
  func.func @transform_3(%arg0: i32) -> (i32, i32) {
    %c0_i32 = arith.constant 0 : i32
    %c0_i32_0 = arith.constant 0 : i32
    %c0_i32_1 = arith.constant 0 : i32
    return %c0_i32, %c0_i32_0 : i32, i32
  }
  func.func @transform_4(%arg0: i32) -> (i32, i32) {
    %c0_i32 = arith.constant 0 : i32
    %c0_i32_0 = arith.constant 0 : i32
    %c0_i32_1 = arith.constant 0 : i32
    return %c0_i32, %c0_i32_0 : i32, i32
  }
  func.func @transform_5(%arg0: i32) -> (i32, i32) {
    %c0_i32 = arith.constant 0 : i32
    %c0_i32_0 = arith.constant 0 : i32
    return %arg0, %c0_i32 : i32, i32
  }
}

</mosaic_0001>

<bundles_post_ra>
// kernel: _enc_forward_jit.1
= control target key start
LH: loop header
LB: loop body
LE: loop exit
PB: predicated region body
PF: predicated region fallthrough
CT: control target
= control target key end

     0   :  { %10 = vsyncpa [#allocation3], 0  ;;  %s5614_s0 = inlined_call_operand.hbm [shape: f32[200,784], index: 0, kind: input, shape index: {}]   ;;  %s5615_s1 = inlined_call_operand.hbm [shape: bf16[784,512], index: 1, kind: input, shape index: {}]   ;;  %s5616_s2 = inlined_call_operand.vmem [shape: f32[1,512], index: 2, kind: input, shape index: {}]   ;;  %s5617_s3 = inlined_call_operand.hbm [shape: f32[512,128], index: 3, kind: input, shape index: {}]   ;;  %s5618_s4 = inlined_call_operand.vmem [shape: f32[1,128], index: 4, kind: input, shape index: {}]   ;;  %s5619_s5 = inlined_call_operand.vmem [shape: f32[200,128], index: 5, kind: output, shape index: {}]  }
   0x1   :  { %11 = vsyncpa [#allocation5], 0  ;;  %s4641_s18 = smov [#allocation4]   ;;  %s4571_s22 = scalar_lea.hbm %s5615_s1, 25088 }
   0x2   :  { %s29_s19 = sshll.u32 %s4641_s18, 4  ;;  %p4572_p0 = scmp.ne.s32.totalorder %s5615_s1, %s4571_s22  ;;  %s30_s19 = int_to_ptr.vmem [resolvable:$true] %s29_s19 }
   0x3   :  { %p4575_p1 = scmp.lt.u32.totalorder %s4571_s22, %s5615_s1 }
   0x5   :  { %p4577_p2 = pnand %p4575_p1, %p4572_p0 }
   0x7   :  { %4580 = shalt.err (!%p4577_p2)
}
   0x8   :  { %s4581_s27 = scalar_lea.vmem %s30_s19, 25088  ;;  %p4586_p4 = scmp.lt.s32.totalorder %s30_s19, %s30_s19 }
   0x9   :  { %p4582_p3 = scmp.ne.s32.totalorder %s30_s19, %s4581_s27  ;;  %p4587_p5 = scmp.lt.s32.totalorder %s4581_s27, %s4581_s27 }
   0xb   :  { %p4588_p6 = por %p4587_p5, %p4586_p4 }
   0xd   :  { %p4589_p7 = pnand %p4588_p6, %p4582_p3 }
   0xf   :  { %4592 = shalt.err (!%p4589_p7)
}
  0x10   :  { %s4642_s28 = smov 256   ;;  %s4643_s29 = smov 16  }
  0x11   :  { %35 = dma.hbm_to_vmem [thread:$0]  %s5615_s1, 25088, %s30_s19, [#allocation5], %s4642_s28, %s4642_s28, %s4643_s29  }
  0x12   :  { %s4644_s7 = smov [#allocation2]   ;;  %s4593_s11 = scalar_lea.hbm %s5614_s0, 22400 }
  0x13   :  { %s17_s8 = sshll.u32 %s4644_s7, 4  ;;  %p4594_p8 = scmp.ne.s32.totalorder %s5614_s0, %s4593_s11  ;;  %s18_s8 = int_to_ptr.vmem [resolvable:$true] %s17_s8 }
  0x14   :  { %p4597_p9 = scmp.lt.u32.totalorder %s4593_s11, %s5614_s0 }
  0x16   :  { %p4599_p10 = pnand %p4597_p9, %p4594_p8 }
  0x18   :  { %4602 = shalt.err (!%p4599_p10)
}
  0x19   :  { %s4603_s16 = scalar_lea.vmem %s18_s8, 22400  ;;  %p4608_p12 = scmp.lt.s32.totalorder %s18_s8, %s18_s8 }
  0x1a   :  { %p4604_p11 = scmp.ne.s32.totalorder %s18_s8, %s4603_s16  ;;  %p4609_p13 = scmp.lt.s32.totalorder %s4603_s16, %s4603_s16 }
  0x1c   :  { %p4610_p0 = por %p4609_p13, %p4608_p12 }
  0x1e   :  { %p4611_p1 = pnand %p4610_p0, %p4604_p11 }
  0x20   :  { %4614 = shalt.err (!%p4611_p1)
}
  0x21   :  { %s4645_s1 = smov 896   ;;  %s4646_s17 = smov 56  }
  0x22   :  { %23 = dma.hbm_to_vmem [thread:$0]  %s5614_s0, 22400, %s18_s8, [#allocation3], %s4645_s1, %s4645_s1, %s4646_s17  }
  0x23   :  { %s4647_s20 = smov [#allocation6]   ;;  %s4615_s24 = scalar_lea.hbm %s5617_s3, 8192 }
  0x24   :  { %s43_s21 = sshll.u32 %s4647_s20, 4  ;;  %p4616_p2 = scmp.ne.s32.totalorder %s5617_s3, %s4615_s24  ;;  %s44_s21 = int_to_ptr.vmem [resolvable:$true] %s43_s21 }
  0x25   :  { %p4619_p3 = scmp.lt.u32.totalorder %s4615_s24, %s5617_s3 }
  0x27   :  { %p4621_p4 = pnand %p4619_p3, %p4616_p2 }
  0x29   :  { %4624 = shalt.err (!%p4621_p4)
}
  0x2a   :  { %s4625_s29 = scalar_lea.vmem %s44_s21, 8192  ;;  %p4630_p6 = scmp.lt.s32.totalorder %s44_s21, %s44_s21 }
  0x2b   :  { %p4626_p5 = scmp.ne.s32.totalorder %s44_s21, %s4625_s29  ;;  %p4631_p7 = scmp.lt.s32.totalorder %s4625_s29, %s4625_s29 }
  0x2d   :  { %p4632_p8 = por %p4631_p7, %p4630_p6 }
  0x2f   :  { %p4633_p9 = pnand %p4632_p8, %p4626_p5 }
  0x31   :  { %4636 = shalt.err (!%p4633_p9)
}
  0x32   :  { %s4648_s0 = smov 128   ;;  %s4649_s30 = smov 8  }
  0x33   :  { %49 = dma.hbm_to_vmem [thread:$0]  %s5617_s3, 8192, %s44_s21, [#allocation5], %s4648_s0, %s4648_s0, %s4649_s30  }
  0x34   :  { %4637 = dma.done.wait [#allocation3], 22400  }
  0x35   :  { %4638 = vsyncadd [#allocation3], 4294944896 }
  0x36   :  { %4639 = dma.done.wait [#allocation5], 33280  }
  0x37   :  { %4640 = vsyncadd [#allocation5], 4294934016  ;;  %v5620_v0 = vmov 0   ;;  %v4277_v1 = vld [vmem:[#allocation4 + $0x4] ss:$16 sps:$4 sm:$0xff]   ;;  %v68_v6 = vld [vmem:[#allocation2 + $0x30] sm:$0xff] }
  0x38   :  { %2081 = vmatprep.mubr.bf16.mxu1 %v5620_v0  ;;  %v4279_v2 = vld [vmem:[#allocation4 + $0x604] ss:$16 sps:$4 sm:$0xff]   ;;  %1566 = vmatprep.subr.bf16.mxu0 %v4277_v1  ;;  %v4281_v3 = vld [vmem:[#allocation4] ss:$16 sps:$4 sm:$0xff]   ;;  %vm1526_vm0 = vcmask 130048   ;;  %v82_v17 = vld [vmem:[#allocation2 + $0xa0] sm:$0xff] }
  0x39   :  { %v4282_v4 = vld [vmem:[#allocation4 + $0x600] ss:$16 sps:$4 sm:$0xff]   ;;  %2049 = vmatprep.subr.bf16.mxu1 %v4279_v2  ;;  %v4283_v5 = vld [vmem:[#allocation4 + $0x24] ss:$16 sps:$4 sm:$0xff]   ;;  %1567 = vmatpush1.bf16.msra.mxu0 %v4281_v3  ;;  %v4285_v9 = vld [vmem:[#allocation4 + $0x8] ss:$16 sps:$4 sm:$0xff]  }
  0x3a   :  { %2050 = vmatpush1.bf16.msra.mxu1 %v4282_v4  ;;  %v75_v7 = vld [vmem:[#allocation2 + $0x68] sm:$0xff]  ;;  %1568 = vmatprep.subr.bf16.mxu0 %v4283_v5  ;;  %v4287_v10 = vld [vmem:[#allocation4 + $0xc] ss:$16 sps:$4 sm:$0xff]   ;;  %v4292_v14 = vld [vmem:[#allocation4 + $0x28] ss:$16 sps:$4 sm:$0xff]  }
  0x3b   :  { %v4719_v8 = vpack.c.bf16 %v75_v7, %v68_v6  ;;  %v4288_v11 = vld [vmem:[#allocation4 + $0x20] ss:$16 sps:$4 sm:$0xff]   ;;  %v4289_v12 = vld [vmem:[#allocation4 + $0x44] ss:$16 sps:$4 sm:$0xff]   ;;  %2210 = vmatprep.subr.bf16.mxu1 %v4287_v10  ;;  %v4294_v15 = vld [vmem:[#allocation4 + $0x2c] ss:$16 sps:$4 sm:$0xff]  }
  0x3c   :  { %v4291_v13 = vld [vmem:[#allocation4 + $0x40] ss:$16 sps:$4 sm:$0xff]   ;;  %v4295_v16 = vld [vmem:[#allocation4 + $0x64] ss:$16 sps:$4 sm:$0xff]   ;;  %v4301_v22 = vld [vmem:[#allocation4 + $0x48] ss:$16 sps:$4 sm:$0xff]  }
  0x3d   :  { %3632 = vmatmul.mubr.msk.bf16.vlgmr.msra.gmra.mrb[0].mxu1 %vm1526_vm0, %v4719_v8  ;;  %1569 = vmatpush1.bf16.msra.mxu0 %v4288_v11  ;;  %v89_v18 = vld [vmem:[#allocation2 + $0xd8] sm:$0xff]  ;;  %v4303_v23 = vld [vmem:[#allocation4 + $0x4c] ss:$16 sps:$4 sm:$0xff]   ;;  %v103_v26 = vld [vmem:[#allocation2 + $0x148] sm:$0xff] }
  0x3e   :  { %2211 = vmatpush1.bf16.msra.mxu1 %v4285_v9  ;;  %1570 = vmatprep.subr.bf16.mxu0 %v4289_v12  ;;  %v4724_v19 = vpack.c.bf16 %v89_v18, %v82_v17  ;;  %v4297_v20 = vld [vmem:[#allocation4 + $0x60] ss:$16 sps:$4 sm:$0xff]   ;;  %v4298_v21 = vld [vmem:[#allocation4 + $0x84] ss:$16 sps:$4 sm:$0xff]   ;;  %v96_v25 = vld [vmem:[#allocation2 + $0x110] sm:$0xff] }
  0x3f   :  { %2091 = vmatprep.mubr.bf16.mxu1 %v5620_v0  ;;  %2212 = vmatprep.subr.bf16.mxu1 %v4294_v15  ;;  %v4300_v24 = vld [vmem:[#allocation4 + $0x80] ss:$16 sps:$4 sm:$0xff]   ;;  %v4304_v27 = vld [vmem:[#allocation4 + $0xa4] ss:$16 sps:$4 sm:$0xff]   ;;  %v4309_v28 = vld [vmem:[#allocation4 + $0x68] ss:$16 sps:$4 sm:$0xff]   ;;  %v4729_v30 = vpack.c.bf16 %v103_v26, %v96_v25 }
  0x40   :  { %v4311_v29 = vld [vmem:[#allocation4 + $0x6c] ss:$16 sps:$4 sm:$0xff]   ;;  %v4306_v31 = vld [vmem:[#allocation4 + $0xa0] ss:$16 sps:$4 sm:$0xff]   ;;  %v4307_v32 = vld [vmem:[#allocation4 + $0xc4] ss:$16 sps:$4 sm:$0xff]  }
  0x41   :  { %1571 = vmatpush1.bf16.msra.mxu0 %v4291_v13  ;;  %v4316_v33 = vld [vmem:[#allocation4 + $0x88] ss:$16 sps:$4 sm:$0xff]   ;;  %v4318_v34 = vld [vmem:[#allocation4 + $0x8c] ss:$16 sps:$4 sm:$0xff]   ;;  %v4312_v35 = vld [vmem:[#allocation4 + $0xc0] ss:$16 sps:$4 sm:$0xff]  }
  0x42   :  { %2213 = vmatpush1.bf16.msra.mxu1 %v4292_v14  ;;  %1572 = vmatprep.subr.bf16.mxu0 %v4295_v16  ;;  %v4313_v36 = vld [vmem:[#allocation4 + $0xe4] ss:$16 sps:$4 sm:$0xff]   ;;  %v110_v37 = vld [vmem:[#allocation2 + $0x180] sm:$0xff]  ;;  %v4315_v42 = vld [vmem:[#allocation4 + $0xe0] ss:$16 sps:$4 sm:$0xff]  }
  0x43   :  { %2214 = vmatprep.subr.bf16.mxu1 %v4303_v23  ;;  %v117_v38 = vld [vmem:[#allocation2 + $0x1b8] sm:$0xff]  ;;  %v4325_v39 = vld [vmem:[#allocation4 + $0xa8] ss:$16 sps:$4 sm:$0xff]   ;;  %v4327_v40 = vld [vmem:[#allocation4 + $0xac] ss:$16 sps:$4 sm:$0xff]  }
  0x44   :  { %v4734_v41 = vpack.c.bf16 %v117_v38, %v110_v37  ;;  %v4333_v43 = vld [vmem:[#allocation4 + $0xcc] ss:$16 sps:$4 sm:$0xff]   ;;  %v4319_v44 = vld [vmem:[#allocation4 + $0x104] ss:$16 sps:$4 sm:$0xff]   ;;  %v4331_v45 = vld [vmem:[#allocation4 + $0xc8] ss:$16 sps:$4 sm:$0xff]  }
  0x45   :  { %3633 = vmatmul.mubr.msk.bf16.gmra.mrb[4].mxu1 %vm1526_vm0, %v4724_v19  ;;  %1573 = vmatpush1.bf16.msra.mxu0 %v4297_v20  ;;  %v4321_v46 = vld [vmem:[#allocation4 + $0x100] ss:$16 sps:$4 sm:$0xff]   ;;  %v4322_v47 = vld [vmem:[#allocation4 + $0x124] ss:$16 sps:$4 sm:$0xff]   ;;  %v124_v48 = vld [vmem:[#allocation2 + $0x1f0] sm:$0xff] }
  0x46   :  { %2215 = vmatpush1.bf16.msra.mxu1 %v4301_v22  ;;  %1574 = vmatprep.subr.bf16.mxu0 %v4298_v21  ;;  %v131_v49 = vld [vmem:[#allocation2 + $0x228] sm:$0xff]  ;;  %v4340_v50 = vld [vmem:[#allocation4 + $0xe8] ss:$16 sps:$4 sm:$0xff]   ;;  %v4342_v51 = vld [vmem:[#allocation4 + $0xec] ss:$16 sps:$4 sm:$0xff]  }
  0x47   :  { %2101 = vmatprep.mubr.bf16.mxu1 %v5620_v0  ;;  %2216 = vmatprep.subr.bf16.mxu1 %v4311_v29  ;;  %v4739_v52 = vpack.c.bf16 %v131_v49, %v124_v48  ;;  %v4324_v53 = vld [vmem:[#allocation4 + $0x120] ss:$16 sps:$4 sm:$0xff]   ;;  %v4328_v54 = vld [vmem:[#allocation4 + $0x144] ss:$16 sps:$4 sm:$0xff]   ;;  %v4348_v55 = vld [vmem:[#allocation4 + $0x108] ss:$16 sps:$4 sm:$0xff]  }
  0x48   :  { %v4350_v56 = vld [vmem:[#allocation4 + $0x10c] ss:$16 sps:$4 sm:$0xff]   ;;  %v4330_v57 = vld [vmem:[#allocation4 + $0x140] ss:$16 sps:$4 sm:$0xff]   ;;  %v4334_v58 = vld [vmem:[#allocation4 + $0x164] ss:$16 sps:$4 sm:$0xff]  }
  0x49   :  { %1575 = vmatpush1.bf16.msra.mxu0 %v4300_v24  ;;  %v138_v59 = vld [vmem:[#allocation2 + $0x260] sm:$0xff]  ;;  %v145_v60 = vld [vmem:[#allocation2 + $0x298] sm:$0xff]  ;;  %v63_v61 = vld [vmem:[#allocation2 + $0x8] sm:$0xff] }
  0x4a   :  { %2217 = vmatpush1.bf16.msra.mxu1 %v4309_v28  ;;  %1576 = vmatprep.subr.bf16.mxu0 %v4304_v27  ;;  %v70_v62 = vld [vmem:[#allocation2 + $0x40] sm:$0xff]  ;;  %v4746_v3 = vpack.c.bf16 %v145_v60, %v138_v59  ;;  %v4336_v4 = vld [vmem:[#allocation4 + $0x160] ss:$16 sps:$4 sm:$0xff]   ;;  %v4337_v6 = vld [vmem:[#allocation4 + $0x184] ss:$16 sps:$4 sm:$0xff]  }
  0x4b   :  { %2218 = vmatprep.subr.bf16.mxu1 %v4318_v34  ;;  %v4744_v63 = vpack.c.bf16 %v70_v62, %v63_v61  ;;  %v4355_v1 = vld [vmem:[#allocation4 + $0x128] ss:$16 sps:$4 sm:$0xff]   ;;  %v4357_v2 = vld [vmem:[#allocation4 + $0x12c] ss:$16 sps:$4 sm:$0xff]   ;;  %v4339_v9 = vld [vmem:[#allocation4 + $0x180] ss:$16 sps:$4 sm:$0xff]  }
  0x4c   :  { %v4360_v5 = vld [vmem:[#allocation4 + $0x14c] ss:$16 sps:$4 sm:$0xff]   ;;  %v4358_v7 = vld [vmem:[#allocation4 + $0x148] ss:$16 sps:$4 sm:$0xff]   ;;  %v4343_v11 = vld [vmem:[#allocation4 + $0x1a4] ss:$16 sps:$4 sm:$0xff]  }
  0x4d   :  { %3634 = vmatmul.mubr.msk.bf16.gmra.mrb[8].mxu1 %vm1526_vm0, %v4729_v30  ;;  %1577 = vmatpush1.bf16.msra.mxu0 %v4306_v31  ;;  %v4363_v10 = vld [vmem:[#allocation4 + $0x16c] ss:$16 sps:$4 sm:$0xff]   ;;  %v159_v13 = vld [vmem:[#allocation2 + $0x308] sm:$0xff]  ;;  %v4361_v14 = vld [vmem:[#allocation4 + $0x168] ss:$16 sps:$4 sm:$0xff]  }
  0x4e   :  { %2111 = vmatprep.mubr.bf16.mxu1 %v5620_v0  ;;  %1578 = vmatprep.subr.bf16.mxu0 %v4307_v32  ;;  %v152_v12 = vld [vmem:[#allocation2 + $0x2d0] sm:$0xff]  ;;  %v4345_v17 = vld [vmem:[#allocation4 + $0x1a0] ss:$16 sps:$4 sm:$0xff]   ;;  %v4346_v18 = vld [vmem:[#allocation4 + $0x1c4] ss:$16 sps:$4 sm:$0xff]  }
  0x4f   :  { %2219 = vmatpush1.bf16.msra.mxu1 %v4316_v33  ;;  %1598 = vmatprep.mubr.bf16.mxu0 %v4744_v63  ;;  %v4366_v15 = vld [vmem:[#allocation4 + $0x18c] ss:$16 sps:$4 sm:$0xff]   ;;  %v4752_v16 = vpack.c.bf16 %v159_v13, %v152_v12  ;;  %v4364_v20 = vld [vmem:[#allocation4 + $0x188] ss:$16 sps:$4 sm:$0xff]   ;;  %v4351_v22 = vld [vmem:[#allocation4 + $0x1c0] ss:$16 sps:$4 sm:$0xff]  }
  0x50   :  { %2220 = vmatprep.subr.bf16.mxu1 %v4327_v40  ;;  %v4369_v21 = vld [vmem:[#allocation4 + $0x1ac] ss:$16 sps:$4 sm:$0xff]   ;;  %v173_v24 = vld [vmem:[#allocation2 + $0x378] sm:$0xff]  ;;  %v4367_v26 = vld [vmem:[#allocation4 + $0x1a8] ss:$16 sps:$4 sm:$0xff]  }
  0x51   :  { %1579 = vmatpush1.bf16.msra.mxu0 %v4312_v35  ;;  %v166_v23 = vld [vmem:[#allocation2 + $0x340] sm:$0xff]  ;;  %v4352_v25 = vld [vmem:[#allocation4 + $0x1e4] ss:$16 sps:$4 sm:$0xff]   ;;  %v4354_v27 = vld [vmem:[#allocation4 + $0x1e0] ss:$16 sps:$4 sm:$0xff]  }
  0x52   :  { %1580 = vmatprep.subr.bf16.mxu0 %v4313_v36  ;;  %v4372_v28 = vld [vmem:[#allocation4 + $0x1cc] ss:$16 sps:$4 sm:$0xff]   ;;  %v4757_v29 = vpack.c.bf16 %v173_v24, %v166_v23  ;;  %v69_v32 = vld [vmem:[#allocation2 + $0x38] sm:$0xff]  ;;  %v4370_v35 = vld [vmem:[#allocation4 + $0x1c8] ss:$16 sps:$4 sm:$0xff]  }
  0x53   :  { %2221 = vmatpush1.bf16.msra.mxu1 %v4325_v39  ;;  %v62_v31 = vld [vmem:[#allocation2] sm:$0xff]  ;;  %v77_v33 = vld [vmem:[#allocation2 + $0x78] sm:$0xff]  ;;  %v84_v34 = vld [vmem:[#allocation2 + $0xb0] sm:$0xff] }
  0x54   :  { %2222 = vmatprep.subr.bf16.mxu1 %v4333_v43  ;;  %v4378_v36 = vld [vmem:[#allocation4 + $0x204] ss:$16 sps:$4 sm:$0xff]   ;;  %v4375_v37 = vld [vmem:[#allocation4 + $0x1ec] ss:$16 sps:$4 sm:$0xff]   ;;  %v4761_v38 = vpack.c.bf16 %v69_v32, %v62_v31  ;;  %v4376_v43 = vld [vmem:[#allocation4 + $0x200] ss:$16 sps:$4 sm:$0xff]  }
  0x55   :  { %3635 = vmatmul.mubr.msk.bf16.gmra.mrb[12].mxu1 %vm1526_vm0, %v4734_v41  ;;  %1581 = vmatpush1.bf16.msra.mxu0 %v4315_v42  ;;  %v180_v39 = vld [vmem:[#allocation2 + $0x3b0] sm:$0xff]  ;;  %v187_v40 = vld [vmem:[#allocation2 + $0x3e8] sm:$0xff]  ;;  %v4764_v42 = vpack.c.bf16 %v84_v34, %v77_v33  ;;  %v90_v62 = vld [vmem:[#allocation2 + $0xe0] sm:$0xff] }
  0x56   :  { %2121 = vmatprep.mubr.bf16.mxu1 %v5620_v0  ;;  %1582 = vmatprep.subr.bf16.mxu0 %v4319_v44  ;;  %v4373_v44 = vld [vmem:[#allocation4 + $0x1e8] ss:$16 sps:$4 sm:$0xff]   ;;  %v4767_v48 = vpack.c.bf16 %v187_v40, %v180_v39  ;;  %v83_v49 = vld [vmem:[#allocation2 + $0xa8] sm:$0xff]  ;;  %v125_v33 = vld [vmem:[#allocation2 + $0x1f8] sm:$0xff] }
  0x57   :  { %2223 = vmatpush1.bf16.msra.mxu1 %v4331_v45  ;;  %v4381_v45 = vld [vmem:[#allocation4 + $0x224] ss:$16 sps:$4 sm:$0xff]   ;;  %v4385_v59 = vld [vmem:[#allocation4 + $0x240] ss:$16 sps:$4 sm:$0xff]   ;;  %v222_v24 = vld [vmem:[#allocation2 + $0x500] sm:$0xff] }
  0x58   :  { %2224 = vmatprep.subr.bf16.mxu1 %v4342_v51  ;;  %v91_v51 = vld [vmem:[#allocation2 + $0xe8] sm:$0xff]  ;;  %v118_v32 = vld [vmem:[#allocation2 + $0x1c0] sm:$0xff]  ;;  %v133_v34 = vld [vmem:[#allocation2 + $0x238] sm:$0xff] }
  0x59   :  { %1583 = vmatpush1.bf16.msra.mxu0 %v4321_v46  ;;  %v76_v46 = vld [vmem:[#allocation2 + $0x70] sm:$0xff]  ;;  %v4393_v60 = vld [vmem:[#allocation4 + $0x264] ss:$16 sps:$4 sm:$0xff]   ;;  %v4394_v12 = vld [vmem:[#allocation4 + $0x280] ss:$16 sps:$4 sm:$0xff]   ;;  %v4805_v39 = vpack.c.bf16 %v125_v33, %v118_v32 }
  0x5a   :  { %1584 = vmatprep.subr.bf16.mxu0 %v4322_v47  ;;  %v4384_v47 = vld [vmem:[#allocation4 + $0x20c] ss:$16 sps:$4 sm:$0xff]   ;;  %v4402_v13 = vld [vmem:[#allocation4 + $0x2a4] ss:$16 sps:$4 sm:$0xff]   ;;  %v4406_v33 = vld [vmem:[#allocation4 + $0x268] ss:$16 sps:$4 sm:$0xff]  }
  0x5b   :  { %2225 = vmatpush1.bf16.msra.mxu1 %v4340_v50  ;;  %v4379_v50 = vld [vmem:[#allocation4 + $0x220] ss:$16 sps:$4 sm:$0xff]   ;;  %v236_v40 = vld [vmem:[#allocation2 + $0x570] sm:$0xff] }
  0x5c   :  { %2226 = vmatprep.subr.bf16.mxu1 %v4350_v56  ;;  %v4772_v56 = vpack.c.bf16 %v83_v49, %v76_v46  ;;  %v132_v46 = vld [vmem:[#allocation2 + $0x230] sm:$0xff]  ;;  %v139_v49 = vld [vmem:[#allocation2 + $0x268] sm:$0xff] }
  0x5d   :  { %3636 = vmatmul.mubr.msk.bf16.gmra.mrb[16].mxu1 %vm1526_vm0, %v4739_v52  ;;  %1585 = vmatpush1.bf16.msra.mxu0 %v4324_v53  ;;  %v98_v53 = vld [vmem:[#allocation2 + $0x120] sm:$0xff] }
  0x5e   :  { %2131 = vmatprep.mubr.bf16.mxu1 %v5620_v0  ;;  %1586 = vmatprep.subr.bf16.mxu0 %v4328_v54  ;;  %v4387_v54 = vld [vmem:[#allocation4 + $0x244] ss:$16 sps:$4 sm:$0xff]  }
  0x5f   :  { %2227 = vmatpush1.bf16.msra.mxu1 %v4348_v55  ;;  %v194_v55 = vld [vmem:[#allocation2 + $0x420] sm:$0xff] }
  0x60   :  { %2228 = vmatprep.subr.bf16.mxu1 %v4357_v2  ;;  %v105_v2 = vld [vmem:[#allocation2 + $0x158] sm:$0xff] }
  0x61   :  { %1587 = vmatpush1.bf16.msra.mxu0 %v4330_v57  ;;  %v201_v57 = vld [vmem:[#allocation2 + $0x458] sm:$0xff] }
  0x62   :  { %1588 = vmatprep.subr.bf16.mxu0 %v4334_v58  ;;  %v4775_v58 = vpack.c.bf16 %v98_v53, %v91_v51  ;;  %v4778_v61 = vpack.c.bf16 %v201_v57, %v194_v55  ;;  %v154_v51 = vld [vmem:[#allocation2 + $0x2e0] sm:$0xff]  ;;  %v4418_v53 = vld [vmem:[#allocation4 + $0x320] ss:$16 sps:$4 sm:$0xff]   ;;  %v4816_v55 = vpack.c.bf16 %v139_v49, %v132_v46  ;;  %v4474_v49 = vld [vmem:[#allocation4 + $0x404] ss:$16 sps:$4 sm:$0xff]  }
  0x63   :  { %2229 = vmatpush1.bf16.msra.mxu1 %v4355_v1  ;;  %v97_v1 = vld [vmem:[#allocation2 + $0x118] sm:$0xff] }
  0x64   :  { %2230 = vmatprep.subr.bf16.mxu1 %v4360_v5  ;;  %v112_v5 = vld [vmem:[#allocation2 + $0x190] sm:$0xff]  ;;  %v4448_v46 = vld [vmem:[#allocation4 + $0x3e0] ss:$16 sps:$4 sm:$0xff]  }
  0x65   :  { %3637 = vmatmul.mubr.msk.bf16.gmra.mrb[20].mxu1 %vm1526_vm0, %v4746_v3  ;;  %1589 = vmatpush1.bf16.msra.mxu0 %v4336_v4  ;;  %v4391_v4 = vld [vmem:[#allocation4 + $0x260] ss:$16 sps:$4 sm:$0xff]  }
  0x66   :  { %2141 = vmatprep.mubr.bf16.mxu1 %v5620_v0  ;;  %1590 = vmatprep.subr.bf16.mxu0 %v4337_v6  ;;  %v4396_v6 = vld [vmem:[#allocation4 + $0x284] ss:$16 sps:$4 sm:$0xff]  }
  0x67   :  { %2231 = vmatpush1.bf16.msra.mxu1 %v4358_v7  ;;  %v208_v7 = vld [vmem:[#allocation2 + $0x490] sm:$0xff] }
  0x68   :  { %2232 = vmatprep.subr.bf16.mxu1 %v4363_v10  ;;  %v215_v10 = vld [vmem:[#allocation2 + $0x4c8] sm:$0xff] }
  0x69   :  { %1591 = vmatpush1.bf16.msra.mxu0 %v4339_v9  ;;  %v4783_v9 = vpack.c.bf16 %v97_v1, %v90_v62  ;;  %v4382_v62 = vld [vmem:[#allocation4 + $0x208] ss:$16 sps:$4 sm:$0xff]  }
  0x6a   :  { %1592 = vmatprep.subr.bf16.mxu0 %v4343_v11  ;;  %v4786_v11 = vpack.c.bf16 %v112_v5, %v105_v2  ;;  %v146_v1 = vld [vmem:[#allocation2 + $0x2a0] sm:$0xff]  ;;  %v153_v2 = vld [vmem:[#allocation2 + $0x2d8] sm:$0xff] }
  0x6b   :  { %2233 = vmatpush1.bf16.msra.mxu1 %v4361_v14  ;;  %v104_v14 = vld [vmem:[#allocation2 + $0x150] sm:$0xff]  ;;  %v161_v5 = vld [vmem:[#allocation2 + $0x318] sm:$0xff] }
  0x6c   :  { %2234 = vmatprep.subr.bf16.mxu1 %v4366_v15  ;;  %v111_v15 = vld [vmem:[#allocation2 + $0x188] sm:$0xff] }
  0x6d   :  { %3638 = vmatmul.mubr.msk.bf16.gmra.mrb[24].mxu1 %vm1526_vm0, %v4752_v16  ;;  %1593 = vmatpush1.bf16.msra.mxu0 %v4345_v17  ;;  %v4789_v17 = vpack.c.bf16 %v215_v10, %v208_v7  ;;  %v4794_v23 = vpack.c.bf16 %v111_v15, %v104_v14  ;;  %v4430_v7 = vld [vmem:[#allocation4 + $0x360] ss:$16 sps:$4 sm:$0xff]   ;;  %v4824_v10 = vpack.c.bf16 %v153_v2, %v146_v1  ;;  %v4399_v14 = vld [vmem:[#allocation4 + $0x24c] ss:$16 sps:$4 sm:$0xff]   ;;  %v4427_v1 = vld [vmem:[#allocation4 + $0x2c8] ss:$16 sps:$4 sm:$0xff]  }
  0x6e   :  { %2151 = vmatprep.mubr.bf16.mxu1 %v5620_v0  ;;  %1594 = vmatprep.subr.bf16.mxu0 %v4346_v18  ;;  %v119_v18 = vld [vmem:[#allocation2 + $0x1c8] sm:$0xff] }
  0x6f   :  { %2235 = vmatpush1.bf16.msra.mxu1 %v4364_v20  ;;  %v4400_v20 = vld [vmem:[#allocation4 + $0x2a0] ss:$16 sps:$4 sm:$0xff]  }
  0x70   :  { %2236 = vmatprep.subr.bf16.mxu1 %v4369_v21  ;;  %v126_v21 = vld [vmem:[#allocation2 + $0x200] sm:$0xff]  ;;  %v4433_v15 = vld [vmem:[#allocation4 + $0x380] ss:$16 sps:$4 sm:$0xff]  }
  0x71   :  { %1595 = vmatpush1.bf16.msra.mxu0 %v4351_v22  ;;  %v4405_v22 = vld [vmem:[#allocation4 + $0x2c4] ss:$16 sps:$4 sm:$0xff]  }
  0x72   :  { %1596 = vmatprep.subr.bf16.mxu0 %v4352_v25  ;;  %v229_v25 = vld [vmem:[#allocation2 + $0x538] sm:$0xff] }
  0x73   :  { %2237 = vmatpush1.bf16.msra.mxu1 %v4367_v26  ;;  %v4797_v26 = vpack.c.bf16 %v126_v21, %v119_v18  ;;  %v4800_v31 = vpack.c.bf16 %v229_v25, %v222_v24  ;;  %v160_v18 = vld [vmem:[#allocation2 + $0x310] sm:$0xff]  ;;  %v4441_v21 = vld [vmem:[#allocation4 + $0x3a4] ss:$16 sps:$4 sm:$0xff]   ;;  %v182_v24 = vld [vmem:[#allocation2 + $0x3c0] sm:$0xff] }
  0x74   :  { %2238 = vmatprep.subr.bf16.mxu1 %v4372_v28  ;;  %v4411_v28 = vld [vmem:[#allocation4 + $0x2e4] ss:$16 sps:$4 sm:$0xff]   ;;  %v4439_v25 = vld [vmem:[#allocation4 + $0x3a0] ss:$16 sps:$4 sm:$0xff]  }
  0x75   :  { %3639 = vmatmul.mubr.msk.bf16.gmra.mrb[28].mxu1 %vm1526_vm0, %v4757_v29  ;;  %1597 = vmatpush1.bf16.msra.mxu0 %v4354_v27  ;;  %v4403_v27 = vld [vmem:[#allocation4 + $0x2c0] ss:$16 sps:$4 sm:$0xff]  }
  0x76   :  { %2161 = vmatprep.mubr.bf16.mxu1 %v5620_v0  ;;  %1727 = vmatprep.subr.bf16.mxu0 %v4378_v36  ;;  %v140_v36 = vld [vmem:[#allocation2 + $0x270] sm:$0xff] }
  0x77   :  { %2239 = vmatpush1.bf16.msra.mxu1 %v4370_v35  ;;  %v4409_v35 = vld [vmem:[#allocation4 + $0x2e0] ss:$16 sps:$4 sm:$0xff]  }
  0x78   :  { %2240 = vmatprep.subr.bf16.mxu1 %v4375_v37  ;;  %1599 = vmatmul.mubr.bf16.vlgmr.msra.gmra.mrb[0].mxu0 %v4761_v38  ;;  %v4417_v37 = vld [vmem:[#allocation4 + $0x304] ss:$16 sps:$4 sm:$0xff]  }
  0x79   :  { %1608 = vmatprep.mubr.bf16.mxu0 %v4764_v42  ;;  %1728 = vmatpush1.bf16.msra.mxu0 %v4376_v43  ;;  %v4808_v43 = vpack.c.bf16 %v140_v36, %v133_v34  ;;  %v4414_v34 = vld [vmem:[#allocation4 + $0x28c] ss:$16 sps:$4 sm:$0xff]   ;;  %v4450_v36 = vld [vmem:[#allocation4 + $0x3e4] ss:$16 sps:$4 sm:$0xff]  }
  0x7a   :  { %1729 = vmatprep.subr.bf16.mxu0 %v4381_v45  ;;  %v4420_v45 = vld [vmem:[#allocation4 + $0x324] ss:$16 sps:$4 sm:$0xff]  }
  0x7b   :  { %2241 = vmatpush1.bf16.msra.mxu1 %v4373_v44  ;;  %v4415_v44 = vld [vmem:[#allocation4 + $0x300] ss:$16 sps:$4 sm:$0xff]  }
  0x7c   :  { %2371 = vmatprep.subr.bf16.mxu1 %v4384_v47  ;;  %v4811_v47 = vpack.c.bf16 %v236_v40, %v236_v40  ;;  %v181_v40 = vld [vmem:[#allocation2 + $0x3b8] sm:$0xff] }
  0x7d   :  { %3640 = vmatmul.mubr.msk.bf16.gmra.mrb[32].mxu1 %vm1526_vm0, %v4767_v48  ;;  %1730 = vmatpush1.bf16.msra.mxu0 %v4379_v50  ;;  %v147_v50 = vld [vmem:[#allocation2 + $0x2a8] sm:$0xff] }
  0x7e   :  { %2171 = vmatprep.mubr.bf16.mxu1 %v5620_v0  ;;  %1731 = vmatprep.subr.bf16.mxu0 %v4387_v54  ;;  %5623 = vst [vmem:[#allocation9_spill] sm:$0xff] %v4811_v47  ;;  %v4426_v54 = vld [vmem:[#allocation4 + $0x344] ss:$16 sps:$4 sm:$0xff]   ;;  %v4819_v57 = vpack.c.bf16 %v154_v51, %v147_v50 }
  0x80   :  { %1609 = vmatmul.mubr.bf16.gmra.mrb[4].mxu0 %v4772_v56 }
  0x81   :  { %1618 = vmatprep.mubr.bf16.mxu0 %v4775_v58  ;;  %1732 = vmatpush1.bf16.msra.mxu0 %v4385_v59  ;;  %v4424_v59 = vld [vmem:[#allocation4 + $0x340] ss:$16 sps:$4 sm:$0xff]  }
  0x82   :  { %1733 = vmatprep.subr.bf16.mxu0 %v4393_v60  ;;  %v4432_v60 = vld [vmem:[#allocation4 + $0x364] ss:$16 sps:$4 sm:$0xff]  }
  0x85   :  { %3641 = vmatmul.mubr.msk.bf16.gmra.mrb[36].mxu1 %vm1526_vm0, %v4778_v61  ;;  %1734 = vmatpush1.bf16.msra.mxu0 %v4391_v4  ;;  %v4390_v4 = vld [vmem:[#allocation4 + $0x22c] ss:$16 sps:$4 sm:$0xff]  }
  0x86   :  { %2181 = vmatprep.mubr.bf16.mxu1 %v5620_v0  ;;  %1735 = vmatprep.subr.bf16.mxu0 %v4396_v6  ;;  %v168_v6 = vld [vmem:[#allocation2 + $0x350] sm:$0xff] }
  0x88   :  { %1619 = vmatmul.mubr.bf16.gmra.mrb[8].mxu0 %v4783_v9 }
  0x89   :  { %1628 = vmatprep.mubr.bf16.mxu0 %v4786_v11  ;;  %1736 = vmatpush1.bf16.msra.mxu0 %v4394_v12  ;;  %v4388_v12 = vld [vmem:[#allocation4 + $0x228] ss:$16 sps:$4 sm:$0xff]  }
  0x8a   :  { %1737 = vmatprep.subr.bf16.mxu0 %v4402_v13  ;;  %v4827_v13 = vpack.c.bf16 %v168_v6, %v161_v5  ;;  %v4436_v5 = vld [vmem:[#allocation4 + $0x2e8] ss:$16 sps:$4 sm:$0xff]   ;;  %v4447_v6 = vld [vmem:[#allocation4 + $0x30c] ss:$16 sps:$4 sm:$0xff]  }
  0x8d   :  { %3642 = vmatmul.mubr.msk.bf16.gmra.mrb[40].mxu1 %vm1526_vm0, %v4789_v17  ;;  %1738 = vmatpush1.bf16.msra.mxu0 %v4400_v20  ;;  %v167_v20 = vld [vmem:[#allocation2 + $0x348] sm:$0xff] }
  0x8e   :  { %2191 = vmatprep.mubr.bf16.mxu1 %v5620_v0  ;;  %1739 = vmatprep.subr.bf16.mxu0 %v4405_v22  ;;  %v4397_v22 = vld [vmem:[#allocation4 + $0x248] ss:$16 sps:$4 sm:$0xff]  }
  0x90   :  { %1629 = vmatmul.mubr.bf16.gmra.mrb[12].mxu0 %v4794_v23 }
  0x91   :  { %1638 = vmatprep.mubr.bf16.mxu0 %v4797_v26  ;;  %1740 = vmatpush1.bf16.msra.mxu0 %v4403_v27  ;;  %v4444_v27 = vld [vmem:[#allocation4 + $0x3c4] ss:$16 sps:$4 sm:$0xff]  }
  0x92   :  { %1741 = vmatprep.subr.bf16.mxu0 %v4411_v28  ;;  %v4832_v28 = vpack.c.bf16 %v167_v20, %v160_v18  ;;  %v4451_v20 = vld [vmem:[#allocation4 + $0x328] ss:$16 sps:$4 sm:$0xff]  }
  0x95   :  { %3643 = vmatmul.mubr.msk.bf16.gmra.mrb[44].mxu1 %vm1526_vm0, %v4800_v31  ;;  %1742 = vmatpush1.bf16.msra.mxu0 %v4409_v35  ;;  %v4442_v35 = vld [vmem:[#allocation4 + $0x3c0] ss:$16 sps:$4 sm:$0xff]  }
  0x96   :  { %2201 = vmatprep.mubr.bf16.mxu1 %v5620_v0  ;;  %1743 = vmatprep.subr.bf16.mxu0 %v4417_v37  ;;  %v174_v37 = vld [vmem:[#allocation2 + $0x380] sm:$0xff] }
  0x97   :  { %v4840_v50 = vpack.c.bf16 %v181_v40, %v174_v37  ;;  %v72_v37 = vld [vmem:[#allocation2 + $0x50] sm:$0xff] }
  0x98   :  { %1639 = vmatmul.mubr.bf16.gmra.mrb[16].mxu0 %v4805_v39  ;;  %v4565_v0 = vld [vmem:[#allocation4 + $0x5e8] ss:$16 sps:$4 sm:$0xff]  }
  0x99   :  { %1648 = vmatprep.mubr.bf16.mxu0 %v4808_v43  ;;  %1744 = vmatpush1.bf16.msra.mxu0 %v4415_v44  ;;  %v4412_v44 = vld [vmem:[#allocation4 + $0x288] ss:$16 sps:$4 sm:$0xff]  }
  0x9a   :  { %1745 = vmatprep.subr.bf16.mxu0 %v4420_v45  ;;  %v196_v45 = vld [vmem:[#allocation2 + $0x430] sm:$0xff] }
  0x9d   :  { %3644 = vmatmul.mubr.msk.bf16.gmra.mrb[48].mxu1 %vm1526_vm0, %v4811_v47  ;;  %1746 = vmatpush1.bf16.msra.mxu0 %v4418_v53  ;;  %v4421_v53 = vld [vmem:[#allocation4 + $0x2a8] ss:$16 sps:$4 sm:$0xff]  }
  0x9e   :  { %2242 = vmatprep.mubr.bf16.mxu1 %v4744_v63  ;;  %1747 = vmatprep.subr.bf16.mxu0 %v4426_v54  ;;  %v4435_v63 = vld [vmem:[#allocation4 + $0x384] ss:$16 sps:$4 sm:$0xff]   ;;  %v4429_v54 = vld [vmem:[#allocation4 + $0x2cc] ss:$16 sps:$4 sm:$0xff]  }
  0x9f   :  { %v206_v47 = vld [vmem:[#allocation2 + $0x480] sm:$0xff] }
  0xa0   :  { %1649 = vmatmul.mubr.bf16.gmra.mrb[20].mxu0 %v4816_v55 }
  0xa1   :  { %1658 = vmatprep.mubr.bf16.mxu0 %v4819_v57  ;;  %1748 = vmatpush1.bf16.msra.mxu0 %v4424_v59  ;;  %v188_v59 = vld [vmem:[#allocation2 + $0x3f0] sm:$0xff] }
  0xa2   :  { %1749 = vmatprep.subr.bf16.mxu0 %v4432_v60  ;;  %v195_v60 = vld [vmem:[#allocation2 + $0x428] sm:$0xff] }
  0xa3   :  { %v4848_v2 = vpack.c.bf16 %v195_v60, %v188_v59  ;;  %v4469_v59 = vld [vmem:[#allocation4 + $0x3e8] ss:$16 sps:$4 sm:$0xff]   ;;  %v4472_v60 = vld [vmem:[#allocation4 + $0x400] ss:$16 sps:$4 sm:$0xff]  }
  0xa5   :  { %2243 = vmatmul.mubr.bf16.vlgmr.msra.gmra.mrb[52].mxu1 %v4761_v38  ;;  %1750 = vmatpush1.bf16.msra.mxu0 %v4430_v7  ;;  %v175_v38 = vld [vmem:[#allocation2 + $0x388] sm:$0xff]  ;;  %v202_v7 = vld [vmem:[#allocation2 + $0x460] sm:$0xff] }
  0xa6   :  { %2372 = vmatpush1.bf16.msra.mxu1 %v4382_v62  ;;  %2252 = vmatprep.mubr.bf16.mxu1 %v4764_v42  ;;  %v4408_v42 = vld [vmem:[#allocation4 + $0x26c] ss:$16 sps:$4 sm:$0xff]   ;;  %v4835_v32 = vpack.c.bf16 %v182_v24, %v175_v38  ;;  %v203_v62 = vld [vmem:[#allocation2 + $0x468] sm:$0xff] }
  0xa7   :  { %2373 = vmatprep.subr.bf16.mxu1 %v4390_v4  ;;  %1751 = vmatprep.subr.bf16.mxu0 %v4435_v63  ;;  %v209_v63 = vld [vmem:[#allocation2 + $0x498] sm:$0xff]  ;;  %v223_v38 = vld [vmem:[#allocation2 + $0x508] sm:$0xff] }
  0xa8   :  { %1659 = vmatmul.mubr.bf16.gmra.mrb[24].mxu0 %v4824_v10  ;;  %v231_v24 = vld [vmem:[#allocation2 + $0x548] sm:$0xff] }
  0xa9   :  { %1668 = vmatprep.mubr.bf16.mxu0 %v4827_v13  ;;  %1752 = vmatpush1.bf16.msra.mxu0 %v4433_v15  ;;  %v4453_v15 = vld [vmem:[#allocation4 + $0x32c] ss:$16 sps:$4 sm:$0xff]  }
  0xaa   :  { %2374 = vmatpush1.bf16.msra.mxu1 %v4388_v12  ;;  %1753 = vmatprep.subr.bf16.mxu0 %v4441_v21  ;;  %v4445_v12 = vld [vmem:[#allocation4 + $0x308] ss:$16 sps:$4 sm:$0xff]   ;;  %v4456_v21 = vld [vmem:[#allocation4 + $0x34c] ss:$16 sps:$4 sm:$0xff]  }
  0xab   :  { %2375 = vmatprep.subr.bf16.mxu1 %v4399_v14  ;;  %v217_v14 = vld [vmem:[#allocation2 + $0x4d8] sm:$0xff] }
  0xad   :  { %2253 = vmatmul.mubr.bf16.gmra.mrb[56].mxu1 %v4772_v56  ;;  %1754 = vmatpush1.bf16.msra.mxu0 %v4439_v25  ;;  %v189_v56 = vld [vmem:[#allocation2 + $0x3f8] sm:$0xff]  ;;  %v4867_v25 = vpack.c.bf16 %v231_v24, %v231_v24 }
  0xae   :  { %2376 = vmatpush1.bf16.msra.mxu1 %v4397_v22  ;;  %2262 = vmatprep.mubr.bf16.mxu1 %v4775_v58  ;;  %v4423_v58 = vld [vmem:[#allocation4 + $0x2ac] ss:$16 sps:$4 sm:$0xff]   ;;  %v4843_v51 = vpack.c.bf16 %v196_v45, %v189_v56  ;;  %v4490_v24 = vld [vmem:[#allocation4 + $0x480] ss:$16 sps:$4 sm:$0xff]  }
  0xaf   :  { %2377 = vmatprep.subr.bf16.mxu1 %v4408_v42  ;;  %1755 = vmatprep.subr.bf16.mxu0 %v4444_v27  ;;  %v216_v22 = vld [vmem:[#allocation2 + $0x4d0] sm:$0xff] }
  0xb0   :  { %1669 = vmatmul.mubr.bf16.gmra.mrb[28].mxu0 %v4832_v28  ;;  %v4454_v42 = vld [vmem:[#allocation4 + $0x348] ss:$16 sps:$4 sm:$0xff]   ;;  %v4468_v56 = vld [vmem:[#allocation4 + $0x3cc] ss:$16 sps:$4 sm:$0xff]  }
  0xb1   :  { %1678 = vmatprep.mubr.bf16.mxu0 %v4835_v32  ;;  %1756 = vmatpush1.bf16.msra.mxu0 %v4442_v35  ;;  %v4457_v27 = vld [vmem:[#allocation4 + $0x368] ss:$16 sps:$4 sm:$0xff]   ;;  %v65_v35 = vld [vmem:[#allocation2 + $0x18] sm:$0xff] }
  0xb2   :  { %2378 = vmatpush1.bf16.msra.mxu1 %v4406_v33  ;;  %1757 = vmatprep.subr.bf16.mxu0 %v4450_v36  ;;  %v4462_v33 = vld [vmem:[#allocation4 + $0x38c] ss:$16 sps:$4 sm:$0xff]   ;;  %v4460_v36 = vld [vmem:[#allocation4 + $0x388] ss:$16 sps:$4 sm:$0xff]   ;;  %v4875_v40 = vpack.c.bf16 %v72_v37, %v65_v35  ;;  %v4501_v35 = vld [vmem:[#allocation4 + $0x4c4] ss:$16 sps:$4 sm:$0xff]  }
  0xb3   :  { %2379 = vmatprep.subr.bf16.mxu1 %v4414_v34  ;;  %v230_v34 = vld [vmem:[#allocation2 + $0x540] sm:$0xff]  ;;  %v64_v45 = vld [vmem:[#allocation2 + $0x10] sm:$0xff]  ;;  %v4499_v37 = vld [vmem:[#allocation4 + $0x4c0] ss:$16 sps:$4 sm:$0xff]  }
  0xb5   :  { %2263 = vmatmul.mubr.bf16.gmra.mrb[60].mxu1 %v4783_v9  ;;  %1758 = vmatpush1.bf16.msra.mxu0 %v4448_v46  ;;  %v210_v9 = vld [vmem:[#allocation2 + $0x4a0] sm:$0xff] }
  0xb6   :  { %2272 = vmatprep.mubr.bf16.mxu1 %v4786_v11  ;;  %2380 = vmatpush1.bf16.msra.mxu1 %v4412_v44  ;;  %v4438_v11 = vld [vmem:[#allocation4 + $0x2ec] ss:$16 sps:$4 sm:$0xff]   ;;  %v4851_v4 = vpack.c.bf16 %v210_v9, %v203_v62  ;;  %v4463_v44 = vld [vmem:[#allocation4 + $0x3a8] ss:$16 sps:$4 sm:$0xff]   ;;  %v4477_v9 = vld [vmem:[#allocation4 + $0x424] ss:$16 sps:$4 sm:$0xff]  }
  0xb7   :  { %2381 = vmatprep.subr.bf16.mxu1 %v4423_v58  ;;  %1888 = vmatprep.subr.bf16.mxu0 %v4474_v49  ;;  %v71_v58 = vld [vmem:[#allocation2 + $0x48] sm:$0xff]  ;;  %v4466_v46 = vld [vmem:[#allocation4 + $0x3c8] ss:$16 sps:$4 sm:$0xff]   ;;  %v4480_v62 = vld [vmem:[#allocation4 + $0x40c] ss:$16 sps:$4 sm:$0xff]  }
  0xb8   :  { %1679 = vmatmul.mubr.bf16.gmra.mrb[32].mxu0 %v4840_v50  ;;  %v79_v49 = vld [vmem:[#allocation2 + $0x88] sm:$0xff] }
  0xb9   :  { %1688 = vmatprep.mubr.bf16.mxu0 %v4843_v51 }
  0xba   :  { %2382 = vmatpush1.bf16.msra.mxu1 %v4421_v53  ;;  %v4471_v53 = vld [vmem:[#allocation4 + $0x3ec] ss:$16 sps:$4 sm:$0xff]  }
  0xbb   :  { %2383 = vmatprep.subr.bf16.mxu1 %v4429_v54 }
  0xbd   :  { %2273 = vmatmul.mubr.bf16.gmra.mrb[64].mxu1 %v4794_v23  ;;  %v224_v23 = vld [vmem:[#allocation2 + $0x510] sm:$0xff] }
  0xbe   :  { %2282 = vmatprep.mubr.bf16.mxu1 %v4797_v26  ;;  %2384 = vmatpush1.bf16.msra.mxu1 %v4427_v1  ;;  %v4856_v26 = vpack.c.bf16 %v209_v63, %v202_v7  ;;  %v4859_v18 = vpack.c.bf16 %v224_v23, %v217_v14  ;;  %v78_v1 = vld [vmem:[#allocation2 + $0x80] sm:$0xff]  ;;  %v4489_v14 = vld [vmem:[#allocation4 + $0x464] ss:$16 sps:$4 sm:$0xff]   ;;  %v92_v23 = vld [vmem:[#allocation2 + $0xf0] sm:$0xff] }
  0xbf   :  { %2385 = vmatprep.subr.bf16.mxu1 %v4438_v11  ;;  %v85_v11 = vld [vmem:[#allocation2 + $0xb8] sm:$0xff] }
  0xc0   :  { %1689 = vmatmul.mubr.bf16.gmra.mrb[36].mxu0 %v4848_v2  ;;  %v4888_v7 = vpack.c.bf16 %v85_v11, %v78_v1  ;;  %v4522_v1 = vld [vmem:[#allocation4 + $0x544] ss:$16 sps:$4 sm:$0xff]  }
  0xc1   :  { %1698 = vmatprep.mubr.bf16.mxu0 %v4851_v4 }
  0xc2   :  { %2386 = vmatpush1.bf16.msra.mxu1 %v4436_v5  ;;  %v93_v5 = vld [vmem:[#allocation2 + $0xf8] sm:$0xff] }
  0xc3   :  { %2387 = vmatprep.subr.bf16.mxu1 %v4447_v6  ;;  %v4475_v6 = vld [vmem:[#allocation4 + $0x420] ss:$16 sps:$4 sm:$0xff]  }
  0xc5   :  { %2283 = vmatmul.mubr.bf16.gmra.mrb[68].mxu1 %v4805_v39  ;;  %v4459_v39 = vld [vmem:[#allocation4 + $0x36c] ss:$16 sps:$4 sm:$0xff]  }
  0xc6   :  { %2292 = vmatprep.mubr.bf16.mxu1 %v4808_v43  ;;  %2388 = vmatpush1.bf16.msra.mxu1 %v4445_v12  ;;  %v4864_v43 = vpack.c.bf16 %v223_v38, %v216_v22  ;;  %v4481_v12 = vld [vmem:[#allocation4 + $0x440] ss:$16 sps:$4 sm:$0xff]   ;;  %v4492_v22 = vld [vmem:[#allocation4 + $0x484] ss:$16 sps:$4 sm:$0xff]  }
  0xc7   :  { %2389 = vmatprep.subr.bf16.mxu1 %v4453_v15  ;;  %v99_v15 = vld [vmem:[#allocation2 + $0x128] sm:$0xff] }
  0xc8   :  { %1699 = vmatmul.mubr.bf16.gmra.mrb[40].mxu0 %v4856_v26 }
  0xc9   :  { %1708 = vmatprep.mubr.bf16.mxu0 %v4859_v18 }
  0xca   :  { %2390 = vmatpush1.bf16.msra.mxu1 %v4451_v20  ;;  %v107_v20 = vld [vmem:[#allocation2 + $0x168] sm:$0xff] }
  0xcb   :  { %2391 = vmatprep.subr.bf16.mxu1 %v4456_v21  ;;  %v114_v21 = vld [vmem:[#allocation2 + $0x1a0] sm:$0xff] }
  0xcc   :  { %v4899_v38 = vpack.c.bf16 %v114_v21, %v107_v20  ;;  %v4484_v21 = vld [vmem:[#allocation4 + $0x428] ss:$16 sps:$4 sm:$0xff]  }
  0xcd   :  { %2293 = vmatmul.mubr.bf16.gmra.mrb[72].mxu1 %v4816_v55  ;;  %v4465_v55 = vld [vmem:[#allocation4 + $0x3ac] ss:$16 sps:$4 sm:$0xff]  }
  0xce   :  { %2302 = vmatprep.mubr.bf16.mxu1 %v4819_v57  ;;  %2392 = vmatpush1.bf16.msra.mxu1 %v4454_v42  ;;  %v4872_v57 = vpack.c.bf16 %v230_v34, %v230_v34  ;;  %v4498_v42 = vld [vmem:[#allocation4 + $0x4a4] ss:$16 sps:$4 sm:$0xff]   ;;  %v128_v34 = vld [vmem:[#allocation2 + $0x210] sm:$0xff] }
  0xcf   :  { %2393 = vmatprep.subr.bf16.mxu1 %v4459_v39  ;;  %v106_v39 = vld [vmem:[#allocation2 + $0x160] sm:$0xff] }
  0xd0   :  { %1709 = vmatmul.mubr.bf16.gmra.mrb[44].mxu0 %v4864_v43 }
  0xd1   :  { %1718 = vmatprep.mubr.bf16.mxu0 %v4867_v25 }
  0xd2   :  { %2394 = vmatpush1.bf16.msra.mxu1 %v4457_v27  ;;  %v113_v27 = vld [vmem:[#allocation2 + $0x198] sm:$0xff] }
  0xd3   :  { %2395 = vmatprep.subr.bf16.mxu1 %v4462_v33  ;;  %v121_v33 = vld [vmem:[#allocation2 + $0x1d8] sm:$0xff] }
  0xd5   :  { %2303 = vmatmul.mubr.bf16.gmra.mrb[76].mxu1 %v4824_v10  ;;  %v86_v10 = vld [vmem:[#allocation2 + $0xc0] sm:$0xff] }
  0xd6   :  { %2312 = vmatprep.mubr.bf16.mxu1 %v4827_v13  ;;  %2396 = vmatpush1.bf16.msra.mxu1 %v4460_v36  ;;  %v4880_v13 = vpack.c.bf16 %v71_v58, %v64_v45  ;;  %v4883_v54 = vpack.c.bf16 %v86_v10, %v79_v49  ;;  %v4907_v36 = vpack.c.bf16 %v128_v34, %v121_v33  ;;  %v135_v45 = vld [vmem:[#allocation2 + $0x248] sm:$0xff]  ;;  %v142_v58 = vld [vmem:[#allocation2 + $0x280] sm:$0xff] }
  0xd7   :  { %2397 = vmatprep.subr.bf16.mxu1 %v4465_v55  ;;  %v4507_v55 = vld [vmem:[#allocation4 + $0x4e4] ss:$16 sps:$4 sm:$0xff]   ;;  %v4915_v49 = vpack.c.bf16 %v142_v58, %v135_v45  ;;  %v4511_v10 = vld [vmem:[#allocation4 + $0x500] ss:$16 sps:$4 sm:$0xff]   ;;  %v4493_v34 = vld [vmem:[#allocation4 + $0x448] ss:$16 sps:$4 sm:$0xff]  }
  0xd8   :  { %1719 = vmatmul.mubr.bf16.gmra.mrb[48].mxu0 %v4872_v57 }
  0xd9   :  { %1759 = vmatprep.mubr.bf16.mxu0 %v4875_v40 }
  0xda   :  { %2398 = vmatpush1.bf16.msra.mxu1 %v4463_v44  ;;  %v120_v44 = vld [vmem:[#allocation2 + $0x1d0] sm:$0xff] }
  0xdb   :  { %2399 = vmatprep.subr.bf16.mxu1 %v4468_v56  ;;  %v127_v56 = vld [vmem:[#allocation2 + $0x208] sm:$0xff] }
  0xdd   :  { %2313 = vmatmul.mubr.bf16.gmra.mrb[80].mxu1 %v4832_v28  ;;  %v100_v28 = vld [vmem:[#allocation2 + $0x130] sm:$0xff] }
  0xde   :  { %2322 = vmatprep.mubr.bf16.mxu1 %v4835_v32  ;;  %2400 = vmatpush1.bf16.msra.mxu1 %v4466_v46  ;;  %v4483_v32 = vld [vmem:[#allocation4 + $0x444] ss:$16 sps:$4 sm:$0xff]   ;;  %v4891_v63 = vpack.c.bf16 %v100_v28, %v93_v5  ;;  %v4520_v5 = vld [vmem:[#allocation4 + $0x540] ss:$16 sps:$4 sm:$0xff]  }
  0xdf   :  { %2401 = vmatprep.subr.bf16.mxu1 %v4471_v53  ;;  %v4513_v46 = vld [vmem:[#allocation4 + $0x504] ss:$16 sps:$4 sm:$0xff]  }
  0xe0   :  { %1760 = vmatmul.mubr.bf16.vlgmr.msra.gmra.mrb[0].mxu0 %v4880_v13  ;;  %v4516_v53 = vld [vmem:[#allocation4 + $0x524] ss:$16 sps:$4 sm:$0xff]  }
  0xe1   :  { %1769 = vmatprep.mubr.bf16.mxu0 %v4883_v54  ;;  %1889 = vmatpush1.bf16.msra.mxu0 %v4472_v60  ;;  %v141_v60 = vld [vmem:[#allocation2 + $0x278] sm:$0xff] }
  0xe2   :  { %2402 = vmatpush1.bf16.msra.mxu1 %v4469_v59  ;;  %1890 = vmatprep.subr.bf16.mxu0 %v4477_v9  ;;  %v134_v59 = vld [vmem:[#allocation2 + $0x240] sm:$0xff]  ;;  %v156_v9 = vld [vmem:[#allocation2 + $0x2f0] sm:$0xff]  ;;  %v4528_v28 = vld [vmem:[#allocation4 + $0x564] ss:$16 sps:$4 sm:$0xff]  }
  0xe3   :  { %2532 = vmatprep.subr.bf16.mxu1 %v4480_v62  ;;  %v149_v62 = vld [vmem:[#allocation2 + $0x2b8] sm:$0xff] }
  0xe4   :  { %v4923_v11 = vpack.c.bf16 %v156_v9, %v149_v62  ;;  %v4508_v9 = vld [vmem:[#allocation4 + $0x488] ss:$16 sps:$4 sm:$0xff]  }
  0xe5   :  { %2323 = vmatmul.mubr.bf16.gmra.mrb[84].mxu1 %v4840_v50  ;;  %1891 = vmatpush1.bf16.msra.mxu0 %v4475_v6  ;;  %v4487_v50 = vld [vmem:[#allocation4 + $0x460] ss:$16 sps:$4 sm:$0xff]   ;;  %v4478_v6 = vld [vmem:[#allocation4 + $0x408] ss:$16 sps:$4 sm:$0xff]  }
  0xe6   :  { %2332 = vmatprep.mubr.bf16.mxu1 %v4843_v51  ;;  %1892 = vmatprep.subr.bf16.mxu0 %v4483_v32  ;;  %v4896_v51 = vpack.c.bf16 %v99_v15, %v92_v23  ;;  %v148_v32 = vld [vmem:[#allocation2 + $0x2b0] sm:$0xff]  ;;  %v163_v23 = vld [vmem:[#allocation2 + $0x328] sm:$0xff] }
  0xe7   :  { %v4526_v15 = vld [vmem:[#allocation4 + $0x560] ss:$16 sps:$4 sm:$0xff]  }
  0xe8   :  { %1770 = vmatmul.mubr.bf16.gmra.mrb[4].mxu0 %v4888_v7 }
  0xe9   :  { %1779 = vmatprep.mubr.bf16.mxu0 %v4891_v63  ;;  %1893 = vmatpush1.bf16.msra.mxu0 %v4481_v12  ;;  %v155_v12 = vld [vmem:[#allocation2 + $0x2e8] sm:$0xff] }
  0xea   :  { %1894 = vmatprep.subr.bf16.mxu0 %v4489_v14  ;;  %v4486_v14 = vld [vmem:[#allocation4 + $0x42c] ss:$16 sps:$4 sm:$0xff]   ;;  %v4928_v20 = vpack.c.bf16 %v155_v12, %v148_v32 }
  0xed   :  { %2333 = vmatmul.mubr.bf16.gmra.mrb[88].mxu1 %v4848_v2  ;;  %1895 = vmatpush1.bf16.msra.mxu0 %v4487_v50  ;;  %v4496_v2 = vld [vmem:[#allocation4 + $0x4a0] ss:$16 sps:$4 sm:$0xff]  }
  0xee   :  { %2342 = vmatprep.mubr.bf16.mxu1 %v4851_v4  ;;  %1896 = vmatprep.subr.bf16.mxu0 %v4492_v22  ;;  %v4904_v4 = vpack.c.bf16 %v113_v27, %v106_v39  ;;  %v4495_v22 = vld [vmem:[#allocation4 + $0x44c] ss:$16 sps:$4 sm:$0xff]   ;;  %v4537_v39 = vld [vmem:[#allocation4 + $0x5a4] ss:$16 sps:$4 sm:$0xff]  }
  0xf0   :  { %1780 = vmatmul.mubr.bf16.gmra.mrb[8].mxu0 %v4896_v51 }
  0xf1   :  { %1789 = vmatprep.mubr.bf16.mxu0 %v4899_v38  ;;  %1897 = vmatpush1.bf16.msra.mxu0 %v4490_v24  ;;  %v4529_v24 = vld [vmem:[#allocation4 + $0x580] ss:$16 sps:$4 sm:$0xff]  }
  0xf2   :  { %1898 = vmatprep.subr.bf16.mxu0 %v4498_v42 }
  0xf5   :  { %2343 = vmatmul.mubr.bf16.gmra.mrb[92].mxu1 %v4856_v26  ;;  %1899 = vmatpush1.bf16.msra.mxu0 %v4496_v2  ;;  %v4505_v26 = vld [vmem:[#allocation4 + $0x4e0] ss:$16 sps:$4 sm:$0xff]  }
  0xf6   :  { %2352 = vmatprep.mubr.bf16.mxu1 %v4859_v18  ;;  %1900 = vmatprep.subr.bf16.mxu0 %v4501_v35  ;;  %v4912_v18 = vpack.c.bf16 %v127_v56, %v120_v44  ;;  %v177_v2 = vld [vmem:[#allocation2 + $0x398] sm:$0xff] }
  0xf7   :  { %v4535_v44 = vld [vmem:[#allocation4 + $0x5a0] ss:$16 sps:$4 sm:$0xff]   ;;  %v4540_v56 = vld [vmem:[#allocation4 + $0x5c4] ss:$16 sps:$4 sm:$0xff]  }
  0xf8   :  { %1790 = vmatmul.mubr.bf16.gmra.mrb[12].mxu0 %v4904_v4 }
  0xf9   :  { %1799 = vmatprep.mubr.bf16.mxu0 %v4907_v36  ;;  %1901 = vmatpush1.bf16.msra.mxu0 %v4499_v37  ;;  %v184_v37 = vld [vmem:[#allocation2 + $0x3d0] sm:$0xff] }
  0xfa   :  { %1902 = vmatprep.subr.bf16.mxu0 %v4507_v55  ;;  %v4504_v55 = vld [vmem:[#allocation4 + $0x46c] ss:$16 sps:$4 sm:$0xff]   ;;  %v4947_v58 = vpack.c.bf16 %v184_v37, %v177_v2  ;;  %v4532_v2 = vld [vmem:[#allocation4 + $0x4e8] ss:$16 sps:$4 sm:$0xff]  }
  0xfb   :  { %v4543_v37 = vld [vmem:[#allocation4 + $0x50c] ss:$16 sps:$4 sm:$0xff]  }
  0xfd   :  { %2353 = vmatmul.mubr.bf16.gmra.mrb[96].mxu1 %v4864_v43  ;;  %1903 = vmatpush1.bf16.msra.mxu0 %v4505_v26  ;;  %v4514_v43 = vld [vmem:[#allocation4 + $0x520] ss:$16 sps:$4 sm:$0xff]   ;;  %v4502_v26 = vld [vmem:[#allocation4 + $0x468] ss:$16 sps:$4 sm:$0xff]  }
  0xfe   :  { %2362 = vmatprep.mubr.bf16.mxu1 %v4867_v25  ;;  %1904 = vmatprep.subr.bf16.mxu0 %v4513_v46  ;;  %v4920_v25 = vpack.c.bf16 %v141_v60, %v134_v59  ;;  %v4510_v46 = vld [vmem:[#allocation4 + $0x48c] ss:$16 sps:$4 sm:$0xff]   ;;  %v4546_v59 = vld [vmem:[#allocation4 + $0x5e4] ss:$16 sps:$4 sm:$0xff]  }
 0x100   :  { %1800 = vmatmul.mubr.bf16.gmra.mrb[16].mxu0 %v4912_v18 }
 0x101   :  { %1809 = vmatprep.mubr.bf16.mxu0 %v4915_v49  ;;  %1905 = vmatpush1.bf16.msra.mxu0 %v4511_v10  ;;  %v4538_v10 = vld [vmem:[#allocation4 + $0x5c0] ss:$16 sps:$4 sm:$0xff]  }
 0x102   :  { %1906 = vmatprep.subr.bf16.mxu0 %v4516_v53 }
 0x105   :  { %2363 = vmatmul.mubr.bf16.gmra.mrb[100].mxu1 %v4872_v57  ;;  %1907 = vmatpush1.bf16.msra.mxu0 %v4514_v43  ;;  %v170_v57 = vld [vmem:[#allocation2 + $0x360] sm:$0xff]  ;;  %v191_v43 = vld [vmem:[#allocation2 + $0x408] sm:$0xff] }
 0x106   :  { %2403 = vmatprep.mubr.bf16.mxu1 %v4875_v40  ;;  %1908 = vmatprep.subr.bf16.mxu0 %v4522_v1  ;;  %v4531_v40 = vld [vmem:[#allocation4 + $0x584] ss:$16 sps:$4 sm:$0xff]   ;;  %v4931_v50 = vpack.c.bf16 %v170_v57, %v163_v23  ;;  %v4525_v23 = vld [vmem:[#allocation4 + $0x4cc] ss:$16 sps:$4 sm:$0xff]  }
 0x108   :  { %1810 = vmatmul.mubr.bf16.gmra.mrb[20].mxu0 %v4920_v25 }
 0x109   :  { %1819 = vmatprep.mubr.bf16.mxu0 %v4923_v11  ;;  %1909 = vmatpush1.bf16.msra.mxu0 %v4520_v5  ;;  %v198_v5 = vld [vmem:[#allocation2 + $0x440] sm:$0xff] }
 0x10a   :  { %1910 = vmatprep.subr.bf16.mxu0 %v4528_v28  ;;  %v4519_v28 = vld [vmem:[#allocation4 + $0x4ac] ss:$16 sps:$4 sm:$0xff]   ;;  %v4963_v12 = vpack.c.bf16 %v198_v5, %v191_v43  ;;  %v4547_v43 = vld [vmem:[#allocation4 + $0x528] ss:$16 sps:$4 sm:$0xff]  }
 0x10b   :  { %v4552_v5 = vld [vmem:[#allocation4 + $0x54c] ss:$16 sps:$4 sm:$0xff]  }
 0x10d   :  { %2404 = vmatmul.mubr.bf16.vlgmr.msra.gmra.mrb[52].mxu1 %v4880_v13  ;;  %1911 = vmatpush1.bf16.msra.mxu0 %v4526_v15  ;;  %v162_v13 = vld [vmem:[#allocation2 + $0x320] sm:$0xff] }
 0x10e   :  { %2533 = vmatpush1.bf16.msra.mxu1 %v4478_v6  ;;  %2413 = vmatprep.mubr.bf16.mxu1 %v4883_v54  ;;  %v169_v54 = vld [vmem:[#allocation2 + $0x358] sm:$0xff] }
 0x10f   :  { %2534 = vmatprep.subr.bf16.mxu1 %v4486_v14  ;;  %1912 = vmatprep.subr.bf16.mxu0 %v4531_v40  ;;  %v4944_v45 = vpack.c.bf16 %v169_v54, %v162_v13  ;;  %v4544_v6 = vld [vmem:[#allocation4 + $0x5e0] ss:$16 sps:$4 sm:$0xff]   ;;  %v4517_v14 = vld [vmem:[#allocation4 + $0x4a8] ss:$16 sps:$4 sm:$0xff]   ;;  %v4534_v13 = vld [vmem:[#allocation4 + $0x4ec] ss:$16 sps:$4 sm:$0xff]  }
 0x110   :  { %v4933_v42 = vpop.f32.mrb[0].mxu1  ;;  %1820 = vmatmul.mubr.bf16.gmra.mrb[24].mxu0 %v4928_v20 }
 0x111   :  { %v4936_v27 = vpop.f32.mrb[1].mxu1  ;;  %1829 = vmatprep.mubr.bf16.mxu0 %v4931_v50  ;;  %1913 = vmatpush1.bf16.msra.mxu0 %v4529_v24  ;;  %v205_v24 = vld [vmem:[#allocation2 + $0x478] sm:$0xff] }
 0x112   :  { %v4938_v33 = vpop.f32.mrb[2].mxu1  ;;  %2535 = vmatpush1.bf16.msra.mxu1 %v4484_v21  ;;  %1914 = vmatprep.subr.bf16.mxu0 %v4537_v39  ;;  %v197_v21 = vld [vmem:[#allocation2 + $0x438] sm:$0xff]  ;;  %v212_v39 = vld [vmem:[#allocation2 + $0x4b0] sm:$0xff] }
 0x113   :  { %v4941_v35 = vpop.f32.mrb[3].mxu1  ;;  %2536 = vmatprep.subr.bf16.mxu1 %v4495_v22 }
 0x115   :  { %2414 = vmatmul.mubr.bf16.gmra.mrb[56].mxu1 %v4888_v7  ;;  %1915 = vmatpush1.bf16.msra.mxu0 %v4535_v44  ;;  %v176_v7 = vld [vmem:[#allocation2 + $0x390] sm:$0xff] }
 0x116   :  { %2537 = vmatpush1.bf16.msra.mxu1 %v4493_v34  ;;  %2423 = vmatprep.mubr.bf16.mxu1 %v4891_v63  ;;  %v183_v63 = vld [vmem:[#allocation2 + $0x3c8] sm:$0xff]  ;;  %v4979_v34 = vpack.c.bf16 %v212_v39, %v205_v24 }
 0x117   :  { %2538 = vmatprep.subr.bf16.mxu1 %v4504_v55  ;;  %1916 = vmatprep.subr.bf16.mxu0 %v4540_v56  ;;  %v4960_v32 = vpack.c.bf16 %v183_v63, %v176_v7  ;;  %v4549_v7 = vld [vmem:[#allocation4 + $0x52c] ss:$16 sps:$4 sm:$0xff]  }
 0x118   :  { %v4949_v53 = vpop.f32.mrb[4].mxu1  ;;  %1830 = vmatmul.mubr.bf16.gmra.mrb[28].mxu0 %v4944_v45 }
 0x119   :  { %v4952_v60 = vpop.f32.mrb[5].mxu1  ;;  %1839 = vmatprep.mubr.bf16.mxu0 %v4947_v58  ;;  %1917 = vmatpush1.bf16.msra.mxu0 %v4538_v10  ;;  %v219_v10 = vld [vmem:[#allocation2 + $0x4e8] sm:$0xff] }
 0x11a   :  { %v4954_v62 = vpop.f32.mrb[6].mxu1  ;;  %2539 = vmatpush1.bf16.msra.mxu1 %v4502_v26  ;;  %1918 = vmatprep.subr.bf16.mxu0 %v4546_v59  ;;  %v211_v26 = vld [vmem:[#allocation2 + $0x4a8] sm:$0xff]  ;;  %v226_v59 = vld [vmem:[#allocation2 + $0x520] sm:$0xff] }
 0x11b   :  { %v4957_v1 = vpop.f32.mrb[7].mxu1  ;;  %2540 = vmatprep.subr.bf16.mxu1 %v4510_v46 }
 0x11d   :  { %2424 = vmatmul.mubr.bf16.gmra.mrb[60].mxu1 %v4896_v51  ;;  %1919 = vmatpush1.bf16.msra.mxu0 %v4544_v6  ;;  %v190_v51 = vld [vmem:[#allocation2 + $0x400] sm:$0xff] }
 0x11e   :  { %2433 = vmatprep.mubr.bf16.mxu1 %v4899_v38  ;;  %2541 = vmatpush1.bf16.msra.mxu1 %v4508_v9  ;;  %v4523_v38 = vld [vmem:[#allocation4 + $0x4c8] ss:$16 sps:$4 sm:$0xff]   ;;  %v4976_v54 = vpack.c.bf16 %v197_v21, %v190_v51  ;;  %v4995_v9 = vpack.c.bf16 %v226_v59, %v219_v10  ;;  %v233_v21 = vld [vmem:[#allocation2 + $0x558] sm:$0xff]  ;;  %v67_v10 = vld [vmem:[#allocation2 + $0x28] sm:$0xff] }
 0x11f   :  { %2542 = vmatprep.subr.bf16.mxu1 %v4519_v28  ;;  %v5011_v39 = vpack.c.bf16 %v233_v21, %v233_v21  ;;  %v74_v59 = vld [vmem:[#allocation2 + $0x60] sm:$0xff] }
 0x120   :  { %v4965_v57 = vpop.f32.mrb[8].mxu1  ;;  %1840 = vmatmul.mubr.bf16.gmra.mrb[32].mxu0 %v4960_v32 }
 0x121   :  { %v4968_v15 = vpop.f32.mrb[9].mxu1  ;;  %1849 = vmatprep.mubr.bf16.mxu0 %v4963_v12 }
 0x122   :  { %v4970_v40 = vpop.f32.mrb[10].mxu1  ;;  %2543 = vmatpush1.bf16.msra.mxu1 %v4517_v14 }
 0x123   :  { %v4973_v22 = vpop.f32.mrb[11].mxu1  ;;  %2544 = vmatprep.subr.bf16.mxu1 %v4525_v23  ;;  %v225_v23 = vld [vmem:[#allocation2 + $0x518] sm:$0xff] }
 0x125   :  { %2434 = vmatmul.mubr.bf16.gmra.mrb[64].mxu1 %v4904_v4  ;;  %v204_v4 = vld [vmem:[#allocation2 + $0x470] sm:$0xff] }
 0x126   :  { %2443 = vmatprep.mubr.bf16.mxu1 %v4907_v36  ;;  %2545 = vmatpush1.bf16.msra.mxu1 %v4523_v38  ;;  %v4541_v36 = vld [vmem:[#allocation4 + $0x508] ss:$16 sps:$4 sm:$0xff]   ;;  %v4992_v63 = vpack.c.bf16 %v211_v26, %v204_v4  ;;  %v4555_v38 = vld [vmem:[#allocation4 + $0x56c] ss:$16 sps:$4 sm:$0xff]  }
 0x127   :  { %2546 = vmatprep.subr.bf16.mxu1 %v4534_v13  ;;  %v4553_v13 = vld [vmem:[#allocation4 + $0x568] ss:$16 sps:$4 sm:$0xff]  }
 0x128   :  { %v4981_v55 = vpop.f32.mrb[12].mxu1  ;;  %1850 = vmatmul.mubr.bf16.gmra.mrb[36].mxu0 %v4976_v54 }
 0x129   :  { %v4984_v44 = vpop.f32.mrb[13].mxu1  ;;  %1859 = vmatprep.mubr.bf16.mxu0 %v4979_v34 }
 0x12a   :  { %5624 = vst [vmem:[#allocation10_spill] sm:$0xff] %v4984_v44  ;;  %v4986_v56 = vpop.f32.mrb[14].mxu1  ;;  %2547 = vmatpush1.bf16.msra.mxu1 %v4532_v2  ;;  %v4558_v2 = vld [vmem:[#allocation4 + $0x58c] ss:$16 sps:$4 sm:$0xff]   ;;  %v227_v44 = vld [vmem:[#allocation2 + $0x528] sm:$0xff] }
 0x12b   :  { %5625 = vst [vmem:[#allocation11_spill] sm:$0xff] %v4986_v56  ;;  %v4989_v46 = vpop.f32.mrb[15].mxu1  ;;  %2548 = vmatprep.subr.bf16.mxu1 %v4543_v37  ;;  %v220_v56 = vld [vmem:[#allocation2 + $0x4f0] sm:$0xff] }
 0x12c   :  { %5626 = vst [vmem:[#allocation12_spill] sm:$0xff] %v4989_v46  ;;  %v213_v46 = vld [vmem:[#allocation2 + $0x4b8] sm:$0xff] }
 0x12d   :  { %2444 = vmatmul.mubr.bf16.gmra.mrb[68].mxu1 %v4912_v18  ;;  %v218_v18 = vld [vmem:[#allocation2 + $0x4e0] sm:$0xff] }
 0x12e   :  { %2453 = vmatprep.mubr.bf16.mxu1 %v4915_v49  ;;  %2549 = vmatpush1.bf16.msra.mxu1 %v4541_v36  ;;  %v4550_v49 = vld [vmem:[#allocation4 + $0x548] ss:$16 sps:$4 sm:$0xff]   ;;  %v5008_v24 = vpack.c.bf16 %v225_v23, %v218_v18  ;;  %v4564_v23 = vld [vmem:[#allocation4 + $0x5cc] ss:$16 sps:$4 sm:$0xff]  }
 0x12f   :  { %2550 = vmatprep.subr.bf16.mxu1 %v4549_v7  ;;  %v4556_v36 = vld [vmem:[#allocation4 + $0x588] ss:$16 sps:$4 sm:$0xff]   ;;  %v4561_v7 = vld [vmem:[#allocation4 + $0x5ac] ss:$16 sps:$4 sm:$0xff]  }
 0x130   :  { %v4997_v28 = vpop.f32.mrb[16].mxu1  ;;  %1860 = vmatmul.mubr.bf16.gmra.mrb[40].mxu0 %v4992_v63  ;;  %v4559_v18 = vld [vmem:[#allocation4 + $0x5a8] ss:$16 sps:$4 sm:$0xff]  }
 0x131   :  { %5627 = vst [vmem:[#allocation13_spill] sm:$0xff] %v4997_v28  ;;  %v5000_v6 = vpop.f32.mrb[17].mxu1  ;;  %1869 = vmatprep.mubr.bf16.mxu0 %v4995_v9 }
 0x132   :  { %5628 = vst [vmem:[#allocation14_spill] sm:$0xff] %v5000_v6  ;;  %v5002_v14 = vpop.f32.mrb[18].mxu1  ;;  %2551 = vmatpush1.bf16.msra.mxu1 %v4547_v43 }
 0x133   :  { %5629 = vst [vmem:[#allocation15_spill] sm:$0xff] %v5002_v14  ;;  %v5005_v51 = vpop.f32.mrb[19].mxu1  ;;  %2552 = vmatprep.subr.bf16.mxu1 %v4552_v5  ;;  %v5027_v5 = vpack.c.bf16 %v74_v59, %v67_v10  ;;  %v4567_v10 = vld [vmem:[#allocation4 + $0x5ec] ss:$16 sps:$4 sm:$0xff]  }
 0x134   :  { %5630 = vst [vmem:[#allocation16_spill] sm:$0xff] %v5005_v51 }
 0x135   :  { %2454 = vmatmul.mubr.bf16.gmra.mrb[72].mxu1 %v4920_v25  ;;  %v232_v25 = vld [vmem:[#allocation2 + $0x550] sm:$0xff] }
 0x136   :  { %2463 = vmatprep.mubr.bf16.mxu1 %v4923_v11  ;;  %2553 = vmatpush1.bf16.msra.mxu1 %v4550_v49  ;;  %v5024_v43 = vpack.c.bf16 %v232_v25, %v232_v25  ;;  %v81_v25 = vld [vmem:[#allocation2 + $0x98] sm:$0xff] }
 0x137   :  { %2554 = vmatprep.subr.bf16.mxu1 %v4555_v38 }
 0x138   :  { %v5013_v37 = vpop.f32.mrb[20].mxu1  ;;  %1870 = vmatmul.mubr.bf16.gmra.mrb[44].mxu0 %v5008_v24 }
 0x139   :  { %5631 = vst [vmem:[#allocation17_spill] sm:$0xff] %v5013_v37  ;;  %v5016_v4 = vpop.f32.mrb[21].mxu1  ;;  %1879 = vmatprep.mubr.bf16.mxu0 %v5011_v39 }
 0x13a   :  { %5632 = vst [vmem:[#allocation18_spill] sm:$0xff] %v5016_v4  ;;  %v5018_v26 = vpop.f32.mrb[22].mxu1  ;;  %2555 = vmatpush1.bf16.msra.mxu1 %v4553_v13  ;;  %v73_v13 = vld [vmem:[#allocation2 + $0x58] sm:$0xff] }
 0x13b   :  { %5633 = vst [vmem:[#allocation19_spill] sm:$0xff] %v5018_v26  ;;  %v5021_v11 = vpop.f32.mrb[23].mxu1  ;;  %2556 = vmatprep.subr.bf16.mxu1 %v4558_v2  ;;  %v2965_v26 = vld [vmem:[#allocation6 + $0x58] sm:$0xff] }
 0x13c   :  { %5634 = vst [vmem:[#allocation20_spill] sm:$0xff] %v5021_v11 }
 0x13d   :  { %2464 = vmatmul.mubr.bf16.gmra.mrb[76].mxu1 %v4928_v20  ;;  %v66_v20 = vld [vmem:[#allocation2 + $0x20] sm:$0xff] }
 0x13e   :  { %2473 = vmatprep.mubr.bf16.mxu1 %v4931_v50  ;;  %2557 = vmatpush1.bf16.msra.mxu1 %v4556_v36  ;;  %v4562_v50 = vld [vmem:[#allocation4 + $0x5c8] ss:$16 sps:$4 sm:$0xff]   ;;  %v5040_v59 = vpack.c.bf16 %v73_v13, %v66_v20  ;;  %v87_v20 = vld [vmem:[#allocation2 + $0xc8] sm:$0xff] }
 0x13f   :  { %2558 = vmatprep.subr.bf16.mxu1 %v4561_v7  ;;  %v88_v36 = vld [vmem:[#allocation2 + $0xd0] sm:$0xff]  ;;  %v95_v13 = vld [vmem:[#allocation2 + $0x108] sm:$0xff] }
 0x140   :  { %v5029_v49 = vpop.f32.mrb[24].mxu1  ;;  %1880 = vmatmul.mubr.bf16.gmra.mrb[48].mxu0 %v5024_v43  ;;  %v5043_v7 = vpack.c.bf16 %v88_v36, %v81_v25 }
 0x141   :  { %5635 = vst [vmem:[#allocation21_spill] sm:$0xff] %v5029_v49  ;;  %v5032_v21 = vpop.f32.mrb[25].mxu1  ;;  %1920 = vmatprep.mubr.bf16.mxu0 %v5027_v5 }
 0x142   :  { %5636 = vst [vmem:[#allocation22_spill] sm:$0xff] %v5032_v21  ;;  %v5034_v38 = vpop.f32.mrb[26].mxu1  ;;  %2559 = vmatpush1.bf16.msra.mxu1 %v4559_v18  ;;  %v2961_v21 = vld [vmem:[#allocation6 + $0x38] sm:$0xff] }
 0x143   :  { %5637 = vst [vmem:[#allocation23_spill] sm:$0xff] %v5034_v38  ;;  %v5037_v2 = vpop.f32.mrb[27].mxu1  ;;  %2560 = vmatprep.subr.bf16.mxu1 %v4564_v23  ;;  %v4570_v38 = vld [vmem:[#allocation4 + $0x60c] ss:$16 sps:$4 sm:$0xff]  }
 0x144   :  { %5638 = vst [vmem:[#allocation24_spill] sm:$0xff] %v5037_v2 }
 0x145   :  { %2474 = vmatmul.mubr.bf16.gmra.mrb[80].mxu1 %v4944_v45  ;;  %v80_v45 = vld [vmem:[#allocation2 + $0x90] sm:$0xff] }
 0x146   :  { %2483 = vmatprep.mubr.bf16.mxu1 %v4947_v58  ;;  %2561 = vmatpush1.bf16.msra.mxu1 %v4562_v50  ;;  %v102_v50 = vld [vmem:[#allocation2 + $0x140] sm:$0xff]  ;;  %v5056_v25 = vpack.c.bf16 %v87_v20, %v80_v45  ;;  %v116_v45 = vld [vmem:[#allocation2 + $0x1b0] sm:$0xff] }
 0x147   :  { %2562 = vmatprep.subr.bf16.mxu1 %v4567_v10  ;;  %v5059_v36 = vpack.c.bf16 %v102_v50, %v95_v13 }
 0x148   :  { %v5045_v18 = vpop.f32.mrb[28].mxu1  ;;  %1921 = vmatmul.mubr.bf16.vlgmr.msra.gmra.mrb[0].mxu0 %v5040_v59 }
 0x149   :  { %5639 = vst [vmem:[#allocation25_spill] sm:$0xff] %v5045_v18  ;;  %v5048_v2 = vpop.f32.mrb[29].mxu1  ;;  %1930 = vmatprep.mubr.bf16.mxu0 %v5043_v7 }
 0x14a   :  { %5640 = vst [vmem:[#allocation26_spill] sm:$0xff] %v5048_v2  ;;  %v5050_v23 = vpop.f32.mrb[30].mxu1  ;;  %2563 = vmatpush1.bf16.msra.mxu1 %v4565_v0 }
 0x14b   :  { %5641 = vst [vmem:[#allocation27_spill] sm:$0xff] %v5050_v23  ;;  %v5053_v58 = vpop.f32.mrb[31].mxu1  ;;  %2693 = vmatprep.subr.bf16.mxu1 %v4570_v38  ;;  %v101_v38 = vld [vmem:[#allocation2 + $0x138] sm:$0xff] }
 0x14c   :  { %5642 = vst [vmem:[#allocation28_spill] sm:$0xff] %v5053_v58  ;;  %v94_v58 = vld [vmem:[#allocation2 + $0x100] sm:$0xff] }
 0x14d   :  { %2484 = vmatmul.mubr.bf16.gmra.mrb[84].mxu1 %v4960_v32  ;;  %v109_v32 = vld [vmem:[#allocation2 + $0x178] sm:$0xff] }
 0x14e   :  { %2493 = vmatprep.mubr.bf16.mxu1 %v4963_v12  ;;  %v5072_v12 = vpack.c.bf16 %v101_v38, %v94_v58  ;;  %v5075_v20 = vpack.c.bf16 %v116_v45, %v109_v32  ;;  %v130_v58 = vld [vmem:[#allocation2 + $0x220] sm:$0xff] }
 0x150   :  { %v5061_v10 = vpop.f32.mrb[32].mxu1  ;;  %1931 = vmatmul.mubr.bf16.gmra.mrb[4].mxu0 %v5056_v25 }
 0x151   :  { %5643 = vst [vmem:[#allocation29_spill] sm:$0xff] %v5061_v10  ;;  %v5064_v23 = vpop.f32.mrb[33].mxu1  ;;  %1940 = vmatprep.mubr.bf16.mxu0 %v5059_v36 }
 0x152   :  { %5644 = vst [vmem:[#allocation30_spill] sm:$0xff] %v5064_v23  ;;  %v5066_v0 = vpop.f32.mrb[34].mxu1  ;;  %v115_v23 = vld [vmem:[#allocation2 + $0x1a8] sm:$0xff] }
 0x153   :  { %5645 = vst [vmem:[#allocation31_spill] sm:$0xff] %v5066_v0  ;;  %v5069_v2 = vpop.f32.mrb[35].mxu1 }
 0x154   :  { %5646 = vst [vmem:[#allocation32_spill] sm:$0xff] %v5069_v2  ;;  %v108_v2 = vld [vmem:[#allocation2 + $0x170] sm:$0xff] }
 0x155   :  { %2494 = vmatmul.mubr.bf16.gmra.mrb[88].mxu1 %v4976_v54  ;;  %v123_v54 = vld [vmem:[#allocation2 + $0x1e8] sm:$0xff] }
 0x156   :  { %2503 = vmatprep.mubr.bf16.mxu1 %v4979_v34  ;;  %v5088_v34 = vpack.c.bf16 %v115_v23, %v108_v2  ;;  %v5091_v38 = vpack.c.bf16 %v130_v58, %v123_v54  ;;  %v144_v2 = vld [vmem:[#allocation2 + $0x290] sm:$0xff]  ;;  %v2954_v23 = vld [vmem:[#allocation6] sm:$0xff] }
 0x158   :  { %v5077_v13 = vpop.f32.mrb[36].mxu1  ;;  %1941 = vmatmul.mubr.bf16.gmra.mrb[8].mxu0 %v5072_v12 }
 0x159   :  { %5647 = vst [vmem:[#allocation33_spill] sm:$0xff] %v5077_v13  ;;  %v5080_v50 = vpop.f32.mrb[37].mxu1  ;;  %1950 = vmatprep.mubr.bf16.mxu0 %v5075_v20  ;;  %v137_v13 = vld [vmem:[#allocation2 + $0x258] sm:$0xff] }
 0x15a   :  { %5648 = vst [vmem:[#allocation34_spill] sm:$0xff] %v5080_v50  ;;  %v5082_v0 = vpop.f32.mrb[38].mxu1  ;;  %v129_v50 = vld [vmem:[#allocation2 + $0x218] sm:$0xff]  ;;  %v5110_v18 = vpack.c.bf16 %v144_v2, %v137_v13  ;;  %v151_v13 = vld [vmem:[#allocation2 + $0x2c8] sm:$0xff] }
 0x15b   :  { %5649 = vst [vmem:[#allocation35_spill] sm:$0xff] %v5082_v0  ;;  %v5085_v10 = vpop.f32.mrb[39].mxu1 }
 0x15c   :  { %5650 = vst [vmem:[#allocation36_spill] sm:$0xff] %v5085_v10  ;;  %v122_v10 = vld [vmem:[#allocation2 + $0x1e0] sm:$0xff] }
 0x15d   :  { %2504 = vmatmul.mubr.bf16.gmra.mrb[92].mxu1 %v4992_v63  ;;  %v5106_v58 = vpack.c.bf16 %v129_v50, %v122_v10  ;;  %v136_v50 = vld [vmem:[#allocation2 + $0x250] sm:$0xff] }
 0x15e   :  { %2513 = vmatprep.mubr.bf16.mxu1 %v4995_v9  ;;  %v2955_v9 = vld [vmem:[#allocation6 + $0x8] sm:$0xff] }
 0x15f   :  { %v5103_v54 = vpack.c.bf16 %v2955_v9, %v2954_v23  ;;  %v2959_v9 = vld [vmem:[#allocation6 + $0x28] sm:$0xff] }
 0x160   :  { %v5093_v32 = vpop.f32.mrb[40].mxu1  ;;  %1951 = vmatmul.mubr.bf16.gmra.mrb[12].mxu0 %v5088_v34 }
 0x161   :  { %5651 = vst [vmem:[#allocation37_spill] sm:$0xff] %v5093_v32  ;;  %v5096_v45 = vpop.f32.mrb[41].mxu1  ;;  %1960 = vmatprep.mubr.bf16.mxu0 %v5091_v38  ;;  %v4651_v32 = vmov 0.0|0.0  }
 0x162   :  { %5652 = vst [vmem:[#allocation38_spill] sm:$0xff] %v5096_v45  ;;  %v5098_v0 = vpop.f32.mrb[42].mxu1  ;;  %3659 = vmatprep.subr.bf16.mxu0 %v4651_v32  ;;  %v2957_v45 = vld [vmem:[#allocation6 + $0x18] sm:$0xff] }
 0x163   :  { %5653 = vst [vmem:[#allocation39_spill] sm:$0xff] %v5098_v0  ;;  %v5101_v63 = vpop.f32.mrb[43].mxu1  ;;  %v2956_v0 = vld [vmem:[#allocation6 + $0x10] sm:$0xff]  ;;  %3661 = vmatpush1.bf16.msra.mxu0 %v5103_v54 }
 0x164   :  { %5654 = vst [vmem:[#allocation40_spill] sm:$0xff] %v5101_v63  ;;  %v5113_v63 = vpack.c.bf16 %v2957_v45, %v2956_v0  ;;  %3662 = vmatprep.subr.bf16.mxu0 %v4651_v32  ;;  %v158_v0 = vld [vmem:[#allocation2 + $0x300] sm:$0xff]  ;;  %v2958_v45 = vld [vmem:[#allocation6 + $0x20] sm:$0xff] }
 0x165   :  { %2514 = vmatmul.mubr.bf16.gmra.mrb[96].mxu1 %v5008_v24  ;;  %v5134_v49 = vpack.c.bf16 %v158_v0, %v151_v13  ;;  %v165_v13 = vld [vmem:[#allocation2 + $0x338] sm:$0xff] }
 0x166   :  { %2523 = vmatprep.mubr.bf16.mxu1 %v5011_v39  ;;  %v143_v39 = vld [vmem:[#allocation2 + $0x288] sm:$0xff] }
 0x167   :  { %3664 = vmatpush1.bf16.msra.mxu0 %v5113_v63 }
 0x168   :  { %v5116_v23 = vpop.f32.mrb[44].mxu1  ;;  %1961 = vmatmul.mubr.bf16.gmra.mrb[16].mxu0 %v5106_v58  ;;  %3665 = vmatprep.subr.bf16.mxu0 %v4651_v32 }
 0x169   :  { %5655 = vst [vmem:[#allocation41_spill] sm:$0xff] %v5116_v23  ;;  %v5119_v24 = vpop.f32.mrb[45].mxu1  ;;  %1970 = vmatprep.mubr.bf16.mxu0 %v5110_v18  ;;  %v5128_v23 = vpack.c.bf16 %v2959_v9, %v2958_v45  ;;  %v2963_v9 = vld [vmem:[#allocation6 + $0x48] sm:$0xff] }
 0x16a   :  { %5656 = vst [vmem:[#allocation42_spill] sm:$0xff] %v5119_v24  ;;  %v5121_v10 = vpop.f32.mrb[46].mxu1  ;;  %v5131_v24 = vpack.c.bf16 %v143_v39, %v136_v50  ;;  %v150_v39 = vld [vmem:[#allocation2 + $0x2c0] sm:$0xff] }
 0x16b   :  { %5657 = vst [vmem:[#allocation43_spill] sm:$0xff] %v5121_v10  ;;  %v5125_v2 = vpop.f32.mrb[47].mxu1  ;;  %v2960_v10 = vld [vmem:[#allocation6 + $0x30] sm:$0xff]  ;;  %3667 = vmatpush1.bf16.msra.mxu0 %v5128_v23 }
 0x16c   :  { %5658 = vst [vmem:[#allocation44_spill] sm:$0xff] %v5125_v2  ;;  %v5137_v2 = vpack.c.bf16 %v2961_v21, %v2960_v10  ;;  %3668 = vmatprep.subr.bf16.mxu0 %v4651_v32  ;;  %v172_v21 = vld [vmem:[#allocation2 + $0x370] sm:$0xff]  ;;  %v2962_v10 = vld [vmem:[#allocation6 + $0x40] sm:$0xff] }
 0x16d   :  { %2524 = vmatmul.mubr.bf16.gmra.mrb[100].mxu1 %v5024_v43  ;;  %v4568_v43 = vld [vmem:[#allocation4 + $0x608] ss:$16 sps:$4 sm:$0xff]   ;;  %v5154_v4 = vpack.c.bf16 %v172_v21, %v165_v13 }
 0x16e   :  { %2564 = vmatprep.mubr.bf16.mxu1 %v5027_v5  ;;  %v157_v5 = vld [vmem:[#allocation2 + $0x2f8] sm:$0xff]  ;;  %v2967_v13 = vld [vmem:[#allocation6 + $0x68] sm:$0xff] }
 0x16f   :  { %3670 = vmatpush1.bf16.msra.mxu0 %v5137_v2 }
 0x170   :  { %v5140_v11 = vpop.f32.mrb[48].mxu1  ;;  %1971 = vmatmul.mubr.bf16.gmra.mrb[20].mxu0 %v5131_v24  ;;  %3671 = vmatprep.subr.bf16.mxu0 %v4651_v32 }
 0x171   :  { %5659 = vst [vmem:[#allocation45_spill] sm:$0xff] %v5140_v11  ;;  %v5143_v45 = vpop.f32.mrb[49].mxu1  ;;  %1980 = vmatprep.mubr.bf16.mxu0 %v5134_v49  ;;  %v5148_v11 = vpack.c.bf16 %v2963_v9, %v2962_v10  ;;  %v2968_v10 = vld [vmem:[#allocation6 + $0x70] sm:$0xff]  ;;  %v2969_v9 = vld [vmem:[#allocation6 + $0x78] sm:$0xff] }
 0x172   :  { %5660 = vst [vmem:[#allocation46_spill] sm:$0xff] %v5143_v45  ;;  %v2207_v50 = vpop.f32.mrb[50].mxu1  ;;  %v5151_v45 = vpack.c.bf16 %v157_v5, %v150_v39  ;;  %v171_v39 = vld [vmem:[#allocation2 + $0x368] sm:$0xff]  ;;  %v5174_v37 = vpack.c.bf16 %v2969_v9, %v2968_v10  ;;  %v2973_v9 = vld [vmem:[#allocation6 + $0x98] sm:$0xff] }
 0x173   :  { %v2208_v0 = vpop.f32.mrb[51].mxu1  ;;  %v2964_v50 = vld [vmem:[#allocation6 + $0x50] sm:$0xff]  ;;  %3673 = vmatpush1.bf16.msra.mxu0 %v5148_v11 }
 0x174   :  { %v5157_v0 = vpack.c.bf16 %v2965_v26, %v2964_v50  ;;  %3674 = vmatprep.subr.bf16.mxu0 %v4651_v32  ;;  %v179_v5 = vld [vmem:[#allocation2 + $0x3a8] sm:$0xff] }
 0x175   :  { %2565 = vmatmul.mubr.bf16.vlgmr.msra.gmra.mrb[52].mxu1 %v5040_v59  ;;  %v164_v59 = vld [vmem:[#allocation2 + $0x330] sm:$0xff]  ;;  %v2972_v10 = vld [vmem:[#allocation6 + $0x90] sm:$0xff] }
 0x176   :  { %2694 = vmatpush1.bf16.msra.mxu1 %v4568_v43  ;;  %2574 = vmatprep.mubr.bf16.mxu1 %v5043_v7  ;;  %v186_v43 = vld [vmem:[#allocation2 + $0x3e0] sm:$0xff]  ;;  %v2966_v7 = vld [vmem:[#allocation6 + $0x60] sm:$0xff]  ;;  %v5168_v21 = vpack.c.bf16 %v171_v39, %v164_v59  ;;  %v200_v39 = vld [vmem:[#allocation2 + $0x450] sm:$0xff]  ;;  %v5190_v14 = vpack.c.bf16 %v2973_v9, %v2972_v10 }
 0x177   :  { %3755 = vmatprep.subr.bf16.mxu1 %v4651_v32  ;;  %3676 = vmatpush1.bf16.msra.mxu0 %v5157_v0  ;;  %v5165_v26 = vpack.c.bf16 %v2967_v13, %v2966_v7  ;;  %v5171_v50 = vpack.c.bf16 %v186_v43, %v179_v5  ;;  %v178_v7 = vld [vmem:[#allocation2 + $0x3a0] sm:$0xff]  ;;  %v193_v59 = vld [vmem:[#allocation2 + $0x418] sm:$0xff]  ;;  %v2976_v10 = vld [vmem:[#allocation6 + $0xb0] sm:$0xff] }
 0x178   :  { %1981 = vmatmul.mubr.bf16.gmra.mrb[24].mxu0 %v5151_v45  ;;  %3677 = vmatprep.subr.bf16.mxu0 %v4651_v32  ;;  %v2970_v13 = vld [vmem:[#allocation6 + $0x80] sm:$0xff]  ;;  %v5187_v51 = vpack.c.bf16 %v200_v39, %v193_v59  ;;  %v2977_v9 = vld [vmem:[#allocation6 + $0xb8] sm:$0xff] }
 0x179   :  { %1990 = vmatprep.mubr.bf16.mxu0 %v5154_v4  ;;  %v5202_v28 = vpack.c.bf16 %v2977_v9, %v2976_v10 }
 0x17b   :  { %3679 = vmatpush1.bf16.msra.mxu0 %v5165_v26 }
 0x17c   :  { %3680 = vmatprep.subr.bf16.mxu0 %v4651_v32 }
 0x17d   :  { %2575 = vmatmul.mubr.bf16.gmra.mrb[56].mxu1 %v5056_v25  ;;  %v185_v25 = vld [vmem:[#allocation2 + $0x3d8] sm:$0xff] }
 0x17e   :  { %2584 = vmatprep.mubr.bf16.mxu1 %v5059_v36  ;;  %v2971_v36 = vld [vmem:[#allocation6 + $0x88] sm:$0xff]  ;;  %v5184_v43 = vpack.c.bf16 %v185_v25, %v178_v7  ;;  %v207_v7 = vld [vmem:[#allocation2 + $0x488] sm:$0xff] }
 0x17f   :  { %3682 = vmatpush1.bf16.msra.mxu0 %v5174_v37  ;;  %v5181_v5 = vpack.c.bf16 %v2971_v36, %v2970_v13  ;;  %v192_v13 = vld [vmem:[#allocation2 + $0x410] sm:$0xff]  ;;  %v214_v25 = vld [vmem:[#allocation2 + $0x4c0] sm:$0xff]  ;;  %v2974_v36 = vld [vmem:[#allocation6 + $0xa0] sm:$0xff] }
 0x180   :  { %1991 = vmatmul.mubr.bf16.gmra.mrb[28].mxu0 %v5168_v21  ;;  %3683 = vmatprep.subr.bf16.mxu0 %v4651_v32  ;;  %v312_v6 = vpack.c.bf16 %v214_v25, %v207_v7  ;;  %v2980_v7 = vld [vmem:[#allocation6 + $0xd0] sm:$0xff]  ;;  %v2981_v25 = vld [vmem:[#allocation6 + $0xd8] sm:$0xff] }
 0x181   :  { %2000 = vmatprep.mubr.bf16.mxu0 %v5171_v50  ;;  %v5212_v9 = vpack.c.bf16 %v2981_v25, %v2980_v7  ;;  %v234_v25 = vld [vmem:[#allocation2 + $0x560] sm:$0xff] }
 0x183   :  { %3685 = vmatpush1.bf16.msra.mxu0 %v5181_v5 }
 0x184   :  { %3686 = vmatprep.subr.bf16.mxu0 %v4651_v32 }
 0x185   :  { %2585 = vmatmul.mubr.bf16.gmra.mrb[60].mxu1 %v5072_v12  ;;  %v199_v12 = vld [vmem:[#allocation2 + $0x448] sm:$0xff] }
 0x186   :  { %2594 = vmatprep.mubr.bf16.mxu1 %v5075_v20  ;;  %v2975_v20 = vld [vmem:[#allocation6 + $0xa8] sm:$0xff]  ;;  %v304_v39 = vpack.c.bf16 %v199_v12, %v192_v13  ;;  %v311_v12 = vpack.c.bf16 %v213_v46, %v206_v47 }
 0x187   :  { %3688 = vmatpush1.bf16.msra.mxu0 %v5190_v14  ;;  %v5197_v59 = vpack.c.bf16 %v2975_v20, %v2974_v36  ;;  %v221_v36 = vld [vmem:[#allocation2 + $0x4f8] sm:$0xff]  ;;  %v228_v20 = vld [vmem:[#allocation2 + $0x530] sm:$0xff]  ;;  %v2979_v13 = vld [vmem:[#allocation6 + $0xc8] sm:$0xff] }
 0x188   :  { %2001 = vmatmul.mubr.bf16.gmra.mrb[32].mxu0 %v5184_v43  ;;  %3689 = vmatprep.subr.bf16.mxu0 %v4651_v32  ;;  %v319_v10 = vpack.c.bf16 %v228_v20, %v221_v36  ;;  %v2983_v47 = vld [vmem:[#allocation6 + $0xe8] sm:$0xff]  ;;  %v2984_v20 = vld [vmem:[#allocation6 + $0xf0] sm:$0xff] }
 0x189   :  { %2010 = vmatprep.mubr.bf16.mxu0 %v5187_v51 }
 0x18b   :  { %3691 = vmatpush1.bf16.msra.mxu0 %v5197_v59 }
 0x18c   :  { %3692 = vmatprep.subr.bf16.mxu0 %v4651_v32 }
 0x18d   :  { %2595 = vmatmul.mubr.bf16.gmra.mrb[64].mxu1 %v5088_v34  ;;  %v2978_v34 = vld [vmem:[#allocation6 + $0xc0] sm:$0xff] }
 0x18e   :  { %2604 = vmatprep.mubr.bf16.mxu1 %v5091_v38  ;;  %v5207_v38 = vpack.c.bf16 %v2979_v13, %v2978_v34  ;;  %v235_v34 = vld [vmem:[#allocation2 + $0x568] sm:$0xff]  ;;  %v2985_v13 = vld [vmem:[#allocation6 + $0xf8] sm:$0xff] }
 0x18f   :  { %3694 = vmatpush1.bf16.msra.mxu0 %v5202_v28  ;;  %v326_v36 = vpack.c.bf16 %v235_v34, %v235_v34  ;;  %v5223_v7 = vpack.c.bf16 %v2985_v13, %v2984_v20  ;;  %v2991_v34 = vld [vmem:[#allocation6 + $0x128] sm:$0xff]  ;;  %v2993_v13 = vld [vmem:[#allocation6 + $0x138] sm:$0xff] }
 0x190   :  { %2011 = vmatmul.mubr.bf16.gmra.mrb[36].mxu0 %v304_v39  ;;  %3695 = vmatprep.subr.bf16.mxu0 %v4651_v32 }
 0x191   :  { %2020 = vmatprep.mubr.bf16.mxu0 %v312_v6 }
 0x193   :  { %3697 = vmatpush1.bf16.msra.mxu0 %v5207_v38 }
 0x194   :  { %3698 = vmatprep.subr.bf16.mxu0 %v4651_v32 }
 0x195   :  { %2605 = vmatmul.mubr.bf16.gmra.mrb[68].mxu1 %v5106_v58  ;;  %v2982_v58 = vld [vmem:[#allocation6 + $0xe0] sm:$0xff] }
 0x196   :  { %2614 = vmatprep.mubr.bf16.mxu1 %v5110_v18  ;;  %v5217_v46 = vpack.c.bf16 %v2983_v47, %v2982_v58  ;;  %v318_v18 = vpack.c.bf16 %v227_v44, %v220_v56  ;;  %v325_v44 = vpack.c.bf16 %v234_v25, %v234_v25  ;;  %v5661_v56 = vmov 0  }
 0x197   :  { %3700 = vmatpush1.bf16.msra.mxu0 %v5212_v9 }
 0x198   :  { %2021 = vmatmul.mubr.bf16.gmra.mrb[40].mxu0 %v311_v12  ;;  %3701 = vmatprep.subr.bf16.mxu0 %v4651_v32 }
 0x199   :  { %2030 = vmatprep.mubr.bf16.mxu0 %v319_v10 }
 0x19b   :  { %3703 = vmatpush1.bf16.msra.mxu0 %v5217_v46 }
 0x19c   :  { %3704 = vmatprep.subr.bf16.mxu0 %v4651_v32 }
 0x19d   :  { %2615 = vmatmul.mubr.bf16.gmra.mrb[72].mxu1 %v5131_v24 }
 0x19e   :  { %2624 = vmatprep.mubr.bf16.mxu1 %v5134_v49 }
 0x19f   :  { %3706 = vmatpush1.bf16.msra.mxu0 %v5223_v7 }
 0x1a0   :  { %2031 = vmatmul.mubr.bf16.gmra.mrb[44].mxu0 %v318_v18  ;;  %3707 = vmatprep.subr.bf16.mxu0 %v4651_v32 }
 0x1a1   :  { %2040 = vmatprep.mubr.bf16.mxu0 %v326_v36 }
 0x1a5   :  { %2625 = vmatmul.mubr.bf16.gmra.mrb[76].mxu1 %v5151_v45 }
 0x1a6   :  { %2634 = vmatprep.mubr.bf16.mxu1 %v5154_v4 }
 0x1a8   :  { %2041 = vmatmul.mubr.bf16.gmra.mrb[48].mxu0 %v325_v44 }
 0x1ad   :  { %2635 = vmatmul.mubr.bf16.gmra.mrb[80].mxu1 %v5168_v21 }
 0x1ae   :  { %2644 = vmatprep.mubr.bf16.mxu1 %v5171_v50  ;;  %v2989_v50 = vld [vmem:[#allocation6 + $0x118] sm:$0xff] }
 0x1b5   :  { %2645 = vmatmul.mubr.bf16.gmra.mrb[84].mxu1 %v5184_v43 }
 0x1b6   :  { %2654 = vmatprep.mubr.bf16.mxu1 %v5187_v51 }
 0x1bd   :  { %2655 = vmatmul.mubr.bf16.gmra.mrb[88].mxu1 %v304_v39 }
 0x1be   :  { %2664 = vmatprep.mubr.bf16.mxu1 %v312_v6 }
 0x1c5   :  { %2665 = vmatmul.mubr.bf16.gmra.mrb[92].mxu1 %v311_v12 }
 0x1c6   :  { %2674 = vmatprep.mubr.bf16.mxu1 %v319_v10 }
 0x1cd   :  { %2675 = vmatmul.mubr.bf16.gmra.mrb[96].mxu1 %v318_v18 }
 0x1ce   :  { %2684 = vmatprep.mubr.bf16.mxu1 %v326_v36 }
 0x1d5   :  { %2685 = vmatmul.mubr.bf16.gmra.mrb[100].mxu1 %v325_v44 }
 0x1d6   :  { %2725 = vmatprep.mubr.bf16.mxu1 %v5661_v56 }
 0x1dd   :  { %3645 = vmatmul.mubr.msk.bf16.vlgmr.msra.gmra.mrb[52].mxu1 %vm1526_vm0, %v4719_v8  ;;  %v526_v8 = vlaneseq }
 0x1de   :  { %2735 = vmatprep.mubr.bf16.mxu1 %v5661_v56  ;;  %3771 = vmatpush1.bf16.msra.mxu1 %v5103_v54  ;;  %v2986_v54 = vld [vmem:[#allocation6 + $0x100] sm:$0xff] }
 0x1df   :  { %3756 = vmatprep.subr.bf16.mxu1 %v4651_v32 }
 0x1e2   :  { %3772 = vmatpush1.bf16.msra.mxu1 %v5113_v63 }
 0x1e3   :  { %3757 = vmatprep.subr.bf16.mxu1 %v4651_v32 }
 0x1e5   :  { %3646 = vmatmul.mubr.msk.bf16.gmra.mrb[56].mxu1 %vm1526_vm0, %v4724_v19  ;;  %v5281_v19 = vshrl.u32 %v526_v8, 7 }
 0x1e6   :  { %2745 = vmatprep.mubr.bf16.mxu1 %v5661_v56  ;;  %3773 = vmatpush1.bf16.msra.mxu1 %v5128_v23  ;;  %v2987_v23 = vld [vmem:[#allocation6 + $0x108] sm:$0xff] }
 0x1e7   :  { %3758 = vmatprep.subr.bf16.mxu1 %v4651_v32 }
 0x1ea   :  { %3774 = vmatpush1.bf16.msra.mxu1 %v5137_v2 }
 0x1eb   :  { %3759 = vmatprep.subr.bf16.mxu1 %v4651_v32 }
 0x1ed   :  { %3647 = vmatmul.mubr.msk.bf16.gmra.mrb[60].mxu1 %vm1526_vm0, %v4729_v30  ;;  %v528_v30 = vsub.s32 0, %v5281_v19 }
 0x1ee   :  { %2755 = vmatprep.mubr.bf16.mxu1 %v5661_v56  ;;  %3775 = vmatpush1.bf16.msra.mxu1 %v5148_v11 }
 0x1ef   :  { %3760 = vmatprep.subr.bf16.mxu1 %v4651_v32 }
 0x1f2   :  { %3776 = vmatpush1.bf16.msra.mxu1 %v5157_v0  ;;  %v3708_v0 = vpack.c.bf16 %v2987_v23, %v2986_v54  ;;  %v2997_v54 = vld [vmem:[#allocation6 + $0x158] sm:$0xff] }
 0x1f3   :  { %3761 = vmatprep.subr.bf16.mxu1 %v4651_v32 }
 0x1f5   :  { %3648 = vmatmul.mubr.msk.bf16.gmra.mrb[64].mxu1 %vm1526_vm0, %v4734_v41  ;;  %v5291_v41 = vld [vmem:[%s5616_s2] sm:$0xf] }
 0x1f6   :  { %2765 = vmatprep.mubr.bf16.mxu1 %v5661_v56  ;;  %3777 = vmatpush1.bf16.msra.mxu1 %v5165_v26 }
 0x1f7   :  { %3762 = vmatprep.subr.bf16.mxu1 %v4651_v32 }
 0x1fa   :  { %3778 = vmatpush1.bf16.msra.mxu1 %v5174_v37 }
 0x1fb   :  { %3763 = vmatprep.subr.bf16.mxu1 %v4651_v32 }
 0x1fd   :  { %3649 = vmatmul.mubr.msk.bf16.gmra.mrb[68].mxu1 %vm1526_vm0, %v4739_v52  ;;  %v532_v52 = vsub.s32 1, %v5281_v19 }
 0x1fe   :  { %2775 = vmatprep.mubr.bf16.mxu1 %v5661_v56  ;;  %3779 = vmatpush1.bf16.msra.mxu1 %v5181_v5 }
 0x1ff   :  { %3764 = vmatprep.subr.bf16.mxu1 %v4651_v32 }
 0x202   :  { %3780 = vmatpush1.bf16.msra.mxu1 %v5190_v14 }
 0x203   :  { %3765 = vmatprep.subr.bf16.mxu1 %v4651_v32 }
 0x205   :  { %3650 = vmatmul.mubr.msk.bf16.gmra.mrb[72].mxu1 %vm1526_vm0, %v4746_v3  ;;  %v5298_v3 = vrot.slane %v5291_v41, %v528_v30 }
 0x206   :  { %2785 = vmatprep.mubr.bf16.mxu1 %v5661_v56  ;;  %3781 = vmatpush1.bf16.msra.mxu1 %v5197_v59 }
 0x207   :  { %3766 = vmatprep.subr.bf16.mxu1 %v4651_v32 }
 0x20a   :  { %3782 = vmatpush1.bf16.msra.mxu1 %v5202_v28 }
 0x20b   :  { %3767 = vmatprep.subr.bf16.mxu1 %v4651_v32 }
 0x20d   :  { %3651 = vmatmul.mubr.msk.bf16.gmra.mrb[76].mxu1 %vm1526_vm0, %v4752_v16  ;;  %v5301_v16 = vrot.slane %v5291_v41, %v532_v52 }
 0x20e   :  { %2795 = vmatprep.mubr.bf16.mxu1 %v5661_v56  ;;  %3783 = vmatpush1.bf16.msra.mxu1 %v5207_v38 }
 0x20f   :  { %3768 = vmatprep.subr.bf16.mxu1 %v4651_v32 }
 0x212   :  { %3784 = vmatpush1.bf16.msra.mxu1 %v5212_v9 }
 0x213   :  { %3769 = vmatprep.subr.bf16.mxu1 %v4651_v32 }
 0x215   :  { %3652 = vmatmul.mubr.msk.bf16.gmra.mrb[80].mxu1 %vm1526_vm0, %v4757_v29 }
 0x216   :  { %2805 = vmatprep.mubr.bf16.mxu1 %v5661_v56  ;;  %3785 = vmatpush1.bf16.msra.mxu1 %v5217_v46 }
 0x217   :  { %3770 = vmatprep.subr.bf16.mxu1 %v4651_v32 }
 0x21a   :  { %3786 = vmatpush1.bf16.msra.mxu1 %v5223_v7 }
 0x21b   :  { %v1922_v29 = vpop.f32.mrb[0].mxu0 }
 0x21c   :  { %v3787_v28 = vadd.f32 %v1922_v29, %v5298_v3  ;;  %v1924_v6 = vpop.f32.mrb[1].mxu0 }
 0x21d   :  { %3653 = vmatmul.mubr.msk.bf16.gmra.mrb[84].mxu1 %vm1526_vm0, %v4767_v48  ;;  %v3789_v14 = vadd.f32 %v1924_v6, %v5301_v16  ;;  %v1926_v51 = vpop.f32.mrb[2].mxu0 }
 0x21e   :  { %2815 = vmatprep.mubr.bf16.mxu1 %v5661_v56  ;;  %v3788_v37 = vadd.f32 %v3787_v28, %v4933_v42  ;;  %v3791_v4 = vadd.f32 %v1926_v51, %v5298_v3  ;;  %v1928_v11 = vpop.f32.mrb[3].mxu0  ;;  %v2988_v42 = vld [vmem:[#allocation6 + $0x110] sm:$0xff] }
 0x21f   :  { %v3790_v49 = vadd.f32 %v3789_v14, %v4936_v27  ;;  %v3793_v63 = vadd.f32 %v1928_v11, %v5301_v16  ;;  %v3711_v12 = vpack.c.bf16 %v2989_v50, %v2988_v42  ;;  %v2995_v14 = vld [vmem:[#allocation6 + $0x148] sm:$0xff] }
 0x220   :  { %v3792_v24 = vadd.f32 %v3791_v4, %v4938_v33  ;;  %v2854_v45 = vmax.f32 %v3788_v37, 0.0 }
 0x221   :  { %v2855_v2 = vmax.f32 %v3790_v49, 0.0  ;;  %v3794_v48 = vadd.f32 %v3793_v63, %v4941_v35 }
 0x222   :  { %v2858_v35 = vmax.f32 %v3792_v24, 0.0 }
 0x223   :  { %v2859_v26 = vmax.f32 %v3794_v48, 0.0  ;;  %v1932_v21 = vpop.f32.mrb[4].mxu0  ;;  %3089 = vmatprep.mubr.f32.mxu0 %v2855_v2 }
 0x224   :  { %v3795_v5 = vadd.f32 %v1932_v21, %v5298_v3  ;;  %v1934_v43 = vpop.f32.mrb[5].mxu0  ;;  %3090 = vmatmul.mubr.f32.vlgmr.msra.gmra.mrb[52].mxu0 %v2854_v45  ;;  %v5662_v21 = vld [vmem:[#allocation10_spill] sm:$0xff] }
 0x225   :  { %3654 = vmatmul.mubr.msk.bf16.gmra.mrb[88].mxu1 %vm1526_vm0, %v4778_v61  ;;  %v3797_v27 = vadd.f32 %v1934_v43, %v5301_v16  ;;  %v1936_v33 = vpop.f32.mrb[6].mxu0  ;;  %3094 = vmatprep.mubr.f32.mxu0 %v2859_v26  ;;  %v2990_v61 = vld [vmem:[#allocation6 + $0x120] sm:$0xff]  ;;  %v5663_v43 = vld [vmem:[#allocation11_spill] sm:$0xff] }
 0x226   :  { %2825 = vmatprep.mubr.bf16.mxu1 %v5661_v56  ;;  %v3796_v59 = vadd.f32 %v3795_v5, %v4949_v53  ;;  %v3799_v39 = vadd.f32 %v1936_v33, %v5298_v3  ;;  %v1938_v38 = vpop.f32.mrb[7].mxu0  ;;  %3709 = vmatpush1.bf16.msra.mxu0 %v3708_v0  ;;  %v3714_v18 = vpack.c.bf16 %v2991_v34, %v2990_v61  ;;  %v2999_v5 = vld [vmem:[#allocation6 + $0x168] sm:$0xff]  ;;  %v5664_v33 = vld [vmem:[#allocation12_spill] sm:$0xff]  ;;  %v5665_v34 = vld [vmem:[#allocation9_spill] sm:$0xff] }
 0x227   :  { %v3798_v10 = vadd.f32 %v3797_v27, %v4952_v60  ;;  %v3801_v9 = vadd.f32 %v1938_v38, %v5301_v16  ;;  %3710 = vmatprep.subr.bf16.mxu0 %v4651_v32  ;;  %v2992_v60 = vld [vmem:[#allocation6 + $0x130] sm:$0xff] }
 0x228   :  { %v3800_v58 = vadd.f32 %v3799_v39, %v4954_v62  ;;  %3095 = vmatmul.mubr.f32.gmra.mrb[54].mxu0 %v2858_v35  ;;  %v2862_v53 = vmax.f32 %v3796_v59, 0.0  ;;  %v3717_v29 = vpack.c.bf16 %v2993_v13, %v2992_v60  ;;  %v5667_v13 = vld [vmem:[#allocation14_spill] sm:$0xff] }
 0x229   :  { %v2863_v47 = vmax.f32 %v3798_v10, 0.0  ;;  %v3802_v46 = vadd.f32 %v3801_v9, %v4957_v1  ;;  %v3001_v10 = vld [vmem:[#allocation6 + $0x178] sm:$0xff] }
 0x22a   :  { %3712 = vmatpush1.bf16.msra.mxu0 %v3711_v12  ;;  %v2866_v44 = vmax.f32 %v3800_v58, 0.0  ;;  %v3000_v12 = vld [vmem:[#allocation6 + $0x170] sm:$0xff] }
 0x22b   :  { %v2867_v36 = vmax.f32 %v3802_v46, 0.0  ;;  %v1942_v20 = vpop.f32.mrb[8].mxu0  ;;  %3099 = vmatprep.mubr.f32.mxu0 %v2863_v47  ;;  %3713 = vmatprep.subr.bf16.mxu0 %v4651_v32  ;;  %v3729_v60 = vpack.c.bf16 %v3001_v10, %v3000_v12  ;;  %v5674_v10 = vld [vmem:[#allocation21_spill] sm:$0xff] }
 0x22c   :  { %v3803_v7 = vadd.f32 %v1942_v20, %v5298_v3  ;;  %v1944_v25 = vpop.f32.mrb[9].mxu0  ;;  %3100 = vmatmul.mubr.f32.gmra.mrb[56].mxu0 %v2862_v53  ;;  %v5666_v53 = vld [vmem:[#allocation13_spill] sm:$0xff] }
 0x22d   :  { %3655 = vmatmul.mubr.msk.bf16.gmra.mrb[92].mxu1 %vm1526_vm0, %v4789_v17  ;;  %v3805_v62 = vadd.f32 %v1944_v25, %v5301_v16  ;;  %v1946_v1 = vpop.f32.mrb[10].mxu0  ;;  %3104 = vmatprep.mubr.f32.mxu0 %v2867_v36  ;;  %v2994_v17 = vld [vmem:[#allocation6 + $0x140] sm:$0xff] }
 0x22e   :  { %2835 = vmatprep.mubr.bf16.mxu1 %v5661_v56  ;;  %v3804_v8 = vadd.f32 %v3803_v7, %v4965_v57  ;;  %v3807_v30 = vadd.f32 %v1946_v1, %v5298_v3  ;;  %v1948_v52 = vpop.f32.mrb[11].mxu0  ;;  %3715 = vmatpush1.bf16.msra.mxu0 %v3714_v18  ;;  %v3720_v11 = vpack.c.bf16 %v2995_v14, %v2994_v17  ;;  %v3003_v1 = vld [vmem:[#allocation6 + $0x188] sm:$0xff] }
 0x22f   :  { %v3806_v28 = vadd.f32 %v3805_v62, %v4968_v15  ;;  %v3809_v6 = vadd.f32 %v1948_v52, %v5301_v16  ;;  %3716 = vmatprep.subr.bf16.mxu0 %v4651_v32  ;;  %v2996_v15 = vld [vmem:[#allocation6 + $0x150] sm:$0xff]  ;;  %v3002_v62 = vld [vmem:[#allocation6 + $0x180] sm:$0xff]  ;;  %v5669_v52 = vld [vmem:[#allocation16_spill] sm:$0xff] }
 0x230   :  { %v3808_v51 = vadd.f32 %v3807_v30, %v4970_v40  ;;  %3105 = vmatmul.mubr.f32.gmra.mrb[58].mxu0 %v2866_v44  ;;  %v2870_v57 = vmax.f32 %v3804_v8, 0.0  ;;  %v3723_v26 = vpack.c.bf16 %v2997_v54, %v2996_v15  ;;  %v5668_v44 = vld [vmem:[#allocation15_spill] sm:$0xff]  ;;  %v5670_v15 = vld [vmem:[#allocation17_spill] sm:$0xff] }
 0x231   :  { %v2871_v37 = vmax.f32 %v3806_v28, 0.0  ;;  %v3810_v4 = vadd.f32 %v3809_v6, %v4973_v22  ;;  %v3732_v6 = vpack.c.bf16 %v3003_v1, %v3002_v62 }
 0x232   :  { %3718 = vmatpush1.bf16.msra.mxu0 %v3717_v29  ;;  %v2874_v2 = vmax.f32 %v3808_v51, 0.0  ;;  %v3004_v51 = vld [vmem:[#allocation6 + $0x190] sm:$0xff] }
 0x233   :  { %v2875_v49 = vmax.f32 %v3810_v4, 0.0  ;;  %v1952_v63 = vpop.f32.mrb[12].mxu0  ;;  %3109 = vmatprep.mubr.f32.mxu0 %v2871_v37  ;;  %3719 = vmatprep.subr.bf16.mxu0 %v4651_v32  ;;  %v3005_v37 = vld [vmem:[#allocation6 + $0x198] sm:$0xff] }
 0x234   :  { %v3811_v23 = vadd.f32 %v1952_v63, %v5298_v3  ;;  %v1954_v24 = vpop.f32.mrb[13].mxu0  ;;  %3110 = vmatmul.mubr.f32.gmra.mrb[60].mxu0 %v2870_v57 }
 0x235   :  { %3656 = vmatmul.mubr.msk.bf16.gmra.mrb[96].mxu1 %vm1526_vm0, %v4800_v31  ;;  %v3813_v40 = vadd.f32 %v1954_v24, %v5301_v16  ;;  %v1956_v22 = vpop.f32.mrb[14].mxu0  ;;  %3114 = vmatprep.mubr.f32.mxu0 %v2875_v49  ;;  %v2998_v31 = vld [vmem:[#allocation6 + $0x160] sm:$0xff] }
 0x236   :  { %2845 = vmatprep.mubr.bf16.mxu1 %v5661_v56  ;;  %v3812_v48 = vadd.f32 %v3811_v23, %v4981_v55  ;;  %v3815_v45 = vadd.f32 %v1956_v22, %v5298_v3  ;;  %v1958_v0 = vpop.f32.mrb[15].mxu0  ;;  %3721 = vmatpush1.bf16.msra.mxu0 %v3720_v11  ;;  %v3726_v59 = vpack.c.bf16 %v2999_v5, %v2998_v31  ;;  %v5671_v22 = vld [vmem:[#allocation18_spill] sm:$0xff] }
 0x237   :  { %v3814_v42 = vadd.f32 %v3813_v40, %v5662_v21  ;;  %v3817_v50 = vadd.f32 %v1958_v0, %v5301_v16  ;;  %3722 = vmatprep.subr.bf16.mxu0 %v4651_v32  ;;  %v3735_v40 = vpack.c.bf16 %v3005_v37, %v3004_v51  ;;  %v3007_v0 = vld [vmem:[#allocation6 + $0x1a8] sm:$0xff]  ;;  %v5678_v51 = vld [vmem:[#allocation25_spill] sm:$0xff] }
 0x238   :  { %v3816_v27 = vadd.f32 %v3815_v45, %v5663_v43  ;;  %3115 = vmatmul.mubr.f32.gmra.mrb[62].mxu0 %v2874_v2  ;;  %v2878_v55 = vmax.f32 %v3812_v48, 0.0  ;;  %v3006_v45 = vld [vmem:[#allocation6 + $0x1a0] sm:$0xff] }
 0x239   :  { %v2879_v56 = vmax.f32 %v3814_v42, 0.0  ;;  %v3818_v35 = vadd.f32 %v3817_v50, %v5664_v33  ;;  %v5673_v50 = vld [vmem:[#allocation20_spill] sm:$0xff]  ;;  %v3738_v43 = vpack.c.bf16 %v3007_v0, %v3006_v45  ;;  %v3008_v33 = vld [vmem:[#allocation6 + $0x1b0] sm:$0xff] }
 0x23a   :  { %3724 = vmatpush1.bf16.msra.mxu0 %v3723_v26  ;;  %v2882_v46 = vmax.f32 %v3816_v27, 0.0  ;;  %v5672_v26 = vld [vmem:[#allocation19_spill] sm:$0xff] }
 0x23b   :  { %v2883_v39 = vmax.f32 %v3818_v35, 0.0  ;;  %v1962_v38 = vpop.f32.mrb[16].mxu0  ;;  %3119 = vmatprep.mubr.f32.mxu0 %v2879_v56  ;;  %3725 = vmatprep.subr.bf16.mxu0 %v4651_v32  ;;  %v3009_v35 = vld [vmem:[#allocation6 + $0x1b8] sm:$0xff] }
 0x23c   :  { %v3819_v9 = vadd.f32 %v1962_v38, %v5298_v3  ;;  %v1964_v61 = vpop.f32.mrb[17].mxu0  ;;  %3120 = vmatmul.mubr.f32.gmra.mrb[64].mxu0 %v2878_v55 }
 0x23d   :  { %3657 = vmatmul.mubr.msk.bf16.gmra.mrb[100].mxu1 %vm1526_vm0, %v5665_v34  ;;  %v3821_v58 = vadd.f32 %v1964_v61, %v5301_v16  ;;  %v1966_v47 = vpop.f32.mrb[18].mxu0  ;;  %3124 = vmatprep.mubr.f32.mxu0 %v2883_v39 }
 0x23e   :  { %v3820_v18 = vadd.f32 %v3819_v9, %v5666_v53  ;;  %v3823_v36 = vadd.f32 %v1966_v47, %v5298_v3  ;;  %v1968_v20 = vpop.f32.mrb[19].mxu0  ;;  %3727 = vmatpush1.bf16.msra.mxu0 %v3726_v59  ;;  %v5675_v47 = vld [vmem:[#allocation22_spill] sm:$0xff] }
 0x23f   :  { %v3822_v7 = vadd.f32 %v3821_v58, %v5667_v13  ;;  %v3825_v25 = vadd.f32 %v1968_v20, %v5301_v16  ;;  %3728 = vmatprep.subr.bf16.mxu0 %v4651_v32  ;;  %v3741_v58 = vpack.c.bf16 %v3009_v35, %v3008_v33  ;;  %v5676_v20 = vld [vmem:[#allocation23_spill] sm:$0xff]  ;;  %v5682_v33 = vld [vmem:[#allocation29_spill] sm:$0xff] }
 0x240   :  { %v3824_v8 = vadd.f32 %v3823_v36, %v5668_v44  ;;  %3125 = vmatmul.mubr.f32.gmra.mrb[66].mxu0 %v2882_v46  ;;  %v2886_v28 = vmax.f32 %v3820_v18, 0.0  ;;  %v3010_v18 = vld [vmem:[#allocation6 + $0x1c0] sm:$0xff]  ;;  %v3011_v36 = vld [vmem:[#allocation6 + $0x1c8] sm:$0xff] }
 0x241   :  { %v2887_v30 = vmax.f32 %v3822_v7, 0.0  ;;  %v3826_v29 = vadd.f32 %v3825_v25, %v5669_v52  ;;  %v5677_v7 = vld [vmem:[#allocation24_spill] sm:$0xff]  ;;  %v3744_v1 = vpack.c.bf16 %v3011_v36, %v3010_v18 }
 0x242   :  { %3730 = vmatpush1.bf16.msra.mxu0 %v3729_v60  ;;  %v2890_v63 = vmax.f32 %v3824_v8, 0.0  ;;  %v3013_v52 = vld [vmem:[#allocation6 + $0x1d8] sm:$0xff] }
 0x243   :  { %v2891_v17 = vmax.f32 %v3826_v29, 0.0  ;;  %v1972_v14 = vpop.f32.mrb[20].mxu0  ;;  %3129 = vmatprep.mubr.f32.mxu0 %v2887_v30  ;;  %3731 = vmatprep.subr.bf16.mxu0 %v4651_v32  ;;  %v3012_v30 = vld [vmem:[#allocation6 + $0x1d0] sm:$0xff] }
 0x244   :  { %v3827_v4 = vadd.f32 %v1972_v14, %v5298_v3  ;;  %v1974_v57 = vpop.f32.mrb[21].mxu0  ;;  %3130 = vmatmul.mubr.f32.gmra.mrb[68].mxu0 %v2886_v28 }
 0x245   :  { %v3829_v11 = vadd.f32 %v1974_v57, %v5301_v16  ;;  %v1976_v49 = vpop.f32.mrb[22].mxu0  ;;  %3134 = vmatprep.mubr.f32.mxu0 %v2891_v17 }
 0x246   :  { %v3828_v54 = vadd.f32 %v3827_v4, %v5670_v15  ;;  %v3831_v23 = vadd.f32 %v1976_v49, %v5298_v3  ;;  %v1978_v24 = vpop.f32.mrb[23].mxu0  ;;  %3733 = vmatpush1.bf16.msra.mxu0 %v3732_v6  ;;  %v5679_v49 = vld [vmem:[#allocation26_spill] sm:$0xff] }
 0x247   :  { %v3830_v2 = vadd.f32 %v3829_v11, %v5671_v22  ;;  %v3833_v48 = vadd.f32 %v1978_v24, %v5301_v16  ;;  %3734 = vmatprep.subr.bf16.mxu0 %v4651_v32  ;;  %v3747_v11 = vpack.c.bf16 %v3013_v52, %v3012_v30  ;;  %v5680_v24 = vld [vmem:[#allocation27_spill] sm:$0xff] }
 0x248   :  { %v3832_v21 = vadd.f32 %v3831_v23, %v5672_v26  ;;  %3135 = vmatmul.mubr.f32.gmra.mrb[70].mxu0 %v2890_v63  ;;  %v2894_v5 = vmax.f32 %v3828_v54, 0.0  ;;  %v3014_v54 = vld [vmem:[#allocation6 + $0x1e0] sm:$0xff]  ;;  %v3015_v23 = vld [vmem:[#allocation6 + $0x1e8] sm:$0xff]  ;;  %v5688_v52 = vld [vmem:[#allocation35_spill] sm:$0xff] }
 0x249   :  { %v2895_v42 = vmax.f32 %v3830_v2, 0.0  ;;  %v3834_v31 = vadd.f32 %v3833_v48, %v5673_v50  ;;  %v5681_v2 = vld [vmem:[#allocation28_spill] sm:$0xff]  ;;  %v3750_v0 = vpack.c.bf16 %v3015_v23, %v3014_v54 }
 0x24a   :  { %3736 = vmatpush1.bf16.msra.mxu0 %v3735_v40  ;;  %v2898_v12 = vmax.f32 %v3832_v21, 0.0  ;;  %v3017_v50 = vld [vmem:[#allocation6 + $0x1f8] sm:$0xff] }
 0x24b   :  { %v2899_v27 = vmax.f32 %v3834_v31, 0.0  ;;  %v1982_v56 = vpop.f32.mrb[24].mxu0  ;;  %3139 = vmatprep.mubr.f32.mxu0 %v2895_v42  ;;  %3737 = vmatprep.subr.bf16.mxu0 %v4651_v32  ;;  %v3016_v42 = vld [vmem:[#allocation6 + $0x1f0] sm:$0xff] }
 0x24c   :  { %v3835_v55 = vadd.f32 %v1982_v56, %v5298_v3  ;;  %v1984_v59 = vpop.f32.mrb[25].mxu0  ;;  %3140 = vmatmul.mubr.f32.gmra.mrb[72].mxu0 %v2894_v5 }
 0x24d   :  { %v3837_v39 = vadd.f32 %v1984_v59, %v5301_v16  ;;  %v1986_v38 = vpop.f32.mrb[26].mxu0  ;;  %3144 = vmatprep.mubr.f32.mxu0 %v2899_v27 }
 0x24e   :  { %v3836_v9 = vadd.f32 %v3835_v55, %v5674_v10  ;;  %v3839_v61 = vadd.f32 %v1986_v38, %v5298_v3  ;;  %v1988_v34 = vpop.f32.mrb[27].mxu0  ;;  %3739 = vmatpush1.bf16.msra.mxu0 %v3738_v43  ;;  %v5683_v38 = vld [vmem:[#allocation30_spill] sm:$0xff] }
 0x24f   :  { %v3838_v46 = vadd.f32 %v3837_v39, %v5675_v47  ;;  %v3841_v53 = vadd.f32 %v1988_v34, %v5301_v16  ;;  %3740 = vmatprep.subr.bf16.mxu0 %v4651_v32  ;;  %v3753_v39 = vpack.c.bf16 %v3017_v50, %v3016_v42 }
 0x250   :  { %v3840_v60 = vadd.f32 %v3839_v61, %v5676_v20  ;;  %3145 = vmatmul.mubr.f32.gmra.mrb[74].mxu0 %v2898_v12  ;;  %v2902_v62 = vmax.f32 %v3836_v9, 0.0  ;;  %v5684_v9 = vld [vmem:[#allocation31_spill] sm:$0xff] }
 0x251   :  { %v2903_v13 = vmax.f32 %v3838_v46, 0.0  ;;  %v3842_v25 = vadd.f32 %v3841_v53, %v5677_v7  ;;  %v5686_v7 = vld [vmem:[#allocation33_spill] sm:$0xff] }
 0x252   :  { %3742 = vmatpush1.bf16.msra.mxu0 %v3741_v58  ;;  %v2906_v14 = vmax.f32 %v3840_v60, 0.0  ;;  %v5685_v58 = vld [vmem:[#allocation32_spill] sm:$0xff] }
 0x253   :  { %v2907_v44 = vmax.f32 %v3842_v25, 0.0  ;;  %v1992_v8 = vpop.f32.mrb[28].mxu0  ;;  %3149 = vmatprep.mubr.f32.mxu0 %v2903_v13  ;;  %3743 = vmatprep.subr.bf16.mxu0 %v4651_v32 }
 0x254   :  { %v3843_v29 = vadd.f32 %v1992_v8, %v5298_v3  ;;  %v1994_v28 = vpop.f32.mrb[29].mxu0  ;;  %3150 = vmatmul.mubr.f32.gmra.mrb[76].mxu0 %v2902_v62 }
 0x255   :  { %v3845_v6 = vadd.f32 %v1994_v28, %v5301_v16  ;;  %v1996_v17 = vpop.f32.mrb[30].mxu0  ;;  %3154 = vmatprep.mubr.f32.mxu0 %v2907_v44  ;;  %v5687_v44 = vld [vmem:[#allocation34_spill] sm:$0xff] }
 0x256   :  { %v3844_v37 = vadd.f32 %v3843_v29, %v5678_v51  ;;  %v3847_v4 = vadd.f32 %v1996_v17, %v5298_v3  ;;  %v1998_v57 = vpop.f32.mrb[31].mxu0  ;;  %3745 = vmatpush1.bf16.msra.mxu0 %v3744_v1 }
 0x257   :  { %v3846_v63 = vadd.f32 %v3845_v6, %v5679_v49  ;;  %v3849_v15 = vadd.f32 %v1998_v57, %v5301_v16  ;;  %3746 = vmatprep.subr.bf16.mxu0 %v4651_v32  ;;  %v5689_v6 = vld [vmem:[#allocation36_spill] sm:$0xff] }
 0x258   :  { %v3848_v40 = vadd.f32 %v3847_v4, %v5680_v24  ;;  %3155 = vmatmul.mubr.f32.gmra.mrb[78].mxu0 %v2906_v14  ;;  %v2910_v45 = vmax.f32 %v3844_v37, 0.0 }
 0x259   :  { %v2911_v22 = vmax.f32 %v3846_v63, 0.0  ;;  %v3850_v48 = vadd.f32 %v3849_v15, %v5681_v2  ;;  %v5690_v15 = vld [vmem:[#allocation37_spill] sm:$0xff] }
 0x25a   :  { %3748 = vmatpush1.bf16.msra.mxu0 %v3747_v11  ;;  %v2914_v56 = vmax.f32 %v3848_v40, 0.0  ;;  %v5691_v40 = vld [vmem:[#allocation38_spill] sm:$0xff] }
 0x25b   :  { %v2915_v26 = vmax.f32 %v3850_v48, 0.0  ;;  %v2002_v21 = vpop.f32.mrb[32].mxu0  ;;  %3159 = vmatprep.mubr.f32.mxu0 %v2911_v22  ;;  %3749 = vmatprep.subr.bf16.mxu0 %v4651_v32  ;;  %v5692_v48 = vld [vmem:[#allocation39_spill] sm:$0xff] }
 0x25c   :  { %v3851_v31 = vadd.f32 %v2002_v21, %v5298_v3  ;;  %v2004_v5 = vpop.f32.mrb[33].mxu0  ;;  %3160 = vmatmul.mubr.f32.gmra.mrb[80].mxu0 %v2910_v45 }
 0x25d   :  { %v3853_v43 = vadd.f32 %v2004_v5, %v5301_v16  ;;  %v2006_v27 = vpop.f32.mrb[34].mxu0  ;;  %3164 = vmatprep.mubr.f32.mxu0 %v2915_v26  ;;  %v5693_v26 = vld [vmem:[#allocation40_spill] sm:$0xff] }
 0x25e   :  { %v3852_v35 = vadd.f32 %v3851_v31, %v5682_v33  ;;  %v3855_v55 = vadd.f32 %v2006_v27, %v5298_v3  ;;  %v2008_v59 = vpop.f32.mrb[35].mxu0  ;;  %3751 = vmatpush1.bf16.msra.mxu0 %v3750_v0 }
 0x25f   :  { %v3854_v12 = vadd.f32 %v3853_v43, %v5683_v38  ;;  %v3857_v10 = vadd.f32 %v2008_v59, %v5301_v16  ;;  %3752 = vmatprep.subr.bf16.mxu0 %v4651_v32  ;;  %v5695_v38 = vld [vmem:[#allocation42_spill] sm:$0xff] }
 0x260   :  { %v3856_v61 = vadd.f32 %v3855_v55, %v5684_v9  ;;  %3165 = vmatmul.mubr.f32.gmra.mrb[82].mxu0 %v2914_v56  ;;  %v2918_v46 = vmax.f32 %v3852_v35, 0.0  ;;  %v5694_v35 = vld [vmem:[#allocation41_spill] sm:$0xff]  ;;  %v5696_v9 = vld [vmem:[#allocation43_spill] sm:$0xff] }
 0x261   :  { %v2919_v34 = vmax.f32 %v3854_v12, 0.0  ;;  %v3858_v47 = vadd.f32 %v3857_v10, %v5685_v58  ;;  %v5697_v58 = vld [vmem:[#allocation44_spill] sm:$0xff] }
 0x262   :  { %3754 = vmatpush1.bf16.msra.mxu0 %v3753_v39  ;;  %v2922_v32 = vmax.f32 %v3856_v61, 0.0 }
 0x263   :  { %v2923_v53 = vmax.f32 %v3858_v47, 0.0  ;;  %v2012_v18 = vpop.f32.mrb[36].mxu0  ;;  %3169 = vmatprep.mubr.f32.mxu0 %v2919_v34 }
 0x264   :  { %v3859_v36 = vadd.f32 %v2012_v18, %v5298_v3  ;;  %v2014_v20 = vpop.f32.mrb[37].mxu0  ;;  %3170 = vmatmul.mubr.f32.gmra.mrb[84].mxu0 %v2918_v46 }
 0x265   :  { %v3861_v60 = vadd.f32 %v2014_v20, %v5301_v16  ;;  %v2016_v13 = vpop.f32.mrb[38].mxu0  ;;  %3174 = vmatprep.mubr.f32.mxu0 %v2923_v53 }
 0x266   :  { %v3860_v25 = vadd.f32 %v3859_v36, %v5686_v7  ;;  %v3863_v62 = vadd.f32 %v2016_v13, %v5298_v3  ;;  %v2018_v1 = vpop.f32.mrb[39].mxu0  ;;  %v5698_v7 = vld [vmem:[#allocation45_spill] sm:$0xff] }
 0x267   :  { %v3862_v8 = vadd.f32 %v3861_v60, %v5687_v44  ;;  %v3865_v30 = vadd.f32 %v2018_v1, %v5301_v16  ;;  %v5699_v1 = vld [vmem:[#allocation46_spill] sm:$0xff] }
 0x268   :  { %v3864_v29 = vadd.f32 %v3863_v62, %v5688_v52  ;;  %3175 = vmatmul.mubr.f32.gmra.mrb[86].mxu0 %v2922_v32  ;;  %v2926_v14 = vmax.f32 %v3860_v25, 0.0  ;;  %v536_v52 = vsub.s32 2, %v5281_v19 }
 0x269   :  { %v2927_v28 = vmax.f32 %v3862_v8, 0.0  ;;  %v3866_v17 = vadd.f32 %v3865_v30, %v5689_v6 }
 0x26a   :  { %v2930_v4 = vmax.f32 %v3864_v29, 0.0  ;;  %v5436_v29 = vrot.slane %v5291_v41, %v536_v52 }
 0x26b   :  { %v2931_v51 = vmax.f32 %v3866_v17, 0.0  ;;  %v2022_v37 = vpop.f32.mrb[40].mxu0  ;;  %3179 = vmatprep.mubr.f32.mxu0 %v2927_v28 }
 0x26c   :  { %v3867_v57 = vadd.f32 %v2022_v37, %v5298_v3  ;;  %v2024_v11 = vpop.f32.mrb[41].mxu0  ;;  %3180 = vmatmul.mubr.f32.gmra.mrb[88].mxu0 %v2926_v14 }
 0x26d   :  { %v3869_v49 = vadd.f32 %v2024_v11, %v5301_v16  ;;  %v2026_v63 = vpop.f32.mrb[42].mxu0  ;;  %3184 = vmatprep.mubr.f32.mxu1 %v2931_v51 }
 0x26e   :  { %v3868_v54 = vadd.f32 %v3867_v57, %v5690_v15  ;;  %v3871_v23 = vadd.f32 %v2026_v63, %v5298_v3  ;;  %v2028_v24 = vpop.f32.mrb[43].mxu0  ;;  %3185 = vmatmul.mubr.f32.vlgmr.msra.gmra.mrb[104].mxu1 %v2930_v4 }
 0x26f   :  { %v3870_v22 = vadd.f32 %v3869_v49, %v5691_v40  ;;  %v3873_v2 = vadd.f32 %v2028_v24, %v5301_v16 }
 0x270   :  { %v3872_v45 = vadd.f32 %v3871_v23, %v5692_v48  ;;  %v2934_v42 = vmax.f32 %v3868_v54, 0.0 }
 0x271   :  { %v2935_v0 = vmax.f32 %v3870_v22, 0.0  ;;  %v3874_v21 = vadd.f32 %v3873_v2, %v5693_v26 }
 0x272   :  { %v2938_v33 = vmax.f32 %v3872_v45, 0.0 }
 0x273   :  { %v2939_v50 = vmax.f32 %v3874_v21, 0.0  ;;  %v2032_v31 = vpop.f32.mrb[44].mxu0  ;;  %3189 = vmatprep.mubr.f32.mxu1 %v2935_v0 }
 0x274   :  { %v3875_v5 = vadd.f32 %v2032_v31, %v5298_v3  ;;  %v2034_v43 = vpop.f32.mrb[45].mxu0  ;;  %3190 = vmatmul.mubr.f32.gmra.mrb[106].mxu1 %v2934_v42 }
 0x275   :  { %v3877_v27 = vadd.f32 %v2034_v43, %v5301_v16  ;;  %v2036_v56 = vpop.f32.mrb[46].mxu0  ;;  %3194 = vmatprep.mubr.f32.mxu1 %v2939_v50 }
 0x276   :  { %v3876_v55 = vadd.f32 %v3875_v5, %v5694_v35  ;;  %v3879_v59 = vadd.f32 %v2036_v56, %v5298_v3  ;;  %v2038_v39 = vpop.f32.mrb[47].mxu0 }
 0x277   :  { %v3878_v12 = vadd.f32 %v3877_v27, %v5695_v38  ;;  %v3881_v10 = vadd.f32 %v2038_v39, %v5301_v16 }
 0x278   :  { %v3880_v61 = vadd.f32 %v3879_v59, %v5696_v9  ;;  %3195 = vmatmul.mubr.f32.gmra.mrb[108].mxu1 %v2938_v33  ;;  %v2942_v46 = vmax.f32 %v3876_v55, 0.0 }
 0x279   :  { %v2943_v34 = vmax.f32 %v3878_v12, 0.0  ;;  %v3882_v47 = vadd.f32 %v3881_v10, %v5697_v58 }
 0x27a   :  { %v2946_v32 = vmax.f32 %v3880_v61, 0.0 }
 0x27b   :  { %v2947_v53 = vmax.f32 %v3882_v47, 0.0  ;;  %v2042_v18 = vpop.f32.mrb[48].mxu0  ;;  %3199 = vmatprep.mubr.f32.mxu1 %v2943_v34 }
 0x27c   :  { %v3883_v36 = vadd.f32 %v2042_v18, %v5298_v3  ;;  %v2044_v20 = vpop.f32.mrb[49].mxu0  ;;  %3200 = vmatmul.mubr.f32.gmra.mrb[110].mxu1 %v2942_v46  ;;  %v540_v3 = vsub.s32 3, %v5281_v19 }
 0x27d   :  { %v3885_v60 = vadd.f32 %v2044_v20, %v5301_v16  ;;  %v2046_v13 = vpop.f32.mrb[50].mxu0  ;;  %3204 = vmatprep.mubr.f32.mxu1 %v2947_v53 }
 0x27e   :  { %v3884_v25 = vadd.f32 %v3883_v36, %v5698_v7  ;;  %v2047_v62 = vpop.f32.mrb[51].mxu0  ;;  %v5439_v16 = vrot.slane %v5291_v41, %v540_v3 }
 0x27f   :  { %v3886_v44 = vadd.f32 %v3885_v60, %v5699_v1 }
 0x280   :  { %3205 = vmatmul.mubr.f32.gmra.mrb[112].mxu1 %v2946_v32  ;;  %v2950_v30 = vmax.f32 %v3884_v25, 0.0 }
 0x281   :  { %v2951_v8 = vmax.f32 %v3886_v44, 0.0 }
 0x283   :  { %3209 = vmatprep.mubr.f32.mxu1 %v2951_v8 }
 0x284   :  { %3210 = vmatmul.mubr.f32.gmra.mrb[114].mxu1 %v2950_v30 }
 0x2b0   :  { %v2727_v28 = vpop.f32.mrb[52].mxu1 }
 0x2b1   :  { %v3887_v6 = vadd.f32 %v2727_v28, %v5436_v29  ;;  %v2729_v17 = vpop.f32.mrb[53].mxu1 }
 0x2b2   :  { %v3888_v14 = vadd.f32 %v2729_v17, %v5439_v16  ;;  %v2731_v51 = vpop.f32.mrb[54].mxu1 }
 0x2b3   :  { %v2733_v37 = vpop.f32.mrb[55].mxu1  ;;  %v2856_v11 = vmax.f32 %v3887_v6, 0.0  ;;  %v3889_v19 = vadd.f32 %v2731_v51, %v5436_v29 }
 0x2b4   :  { %v2857_v4 = vmax.f32 %v3888_v14, 0.0  ;;  %v3890_v57 = vadd.f32 %v2733_v37, %v5439_v16 }
 0x2b5   :  { %v2860_v41 = vmax.f32 %v3889_v19, 0.0 }
 0x2b6   :  { %v2861_v49 = vmax.f32 %v3890_v57, 0.0  ;;  %3279 = vmatprep.mubr.f32.mxu0 %v2857_v4 }
 0x2b7   :  { %3280 = vmatmul.mubr.f32.vlgmr.msra.gmra.mrb[52].mxu0 %v2856_v11 }
 0x2b8   :  { %v2737_v63 = vpop.f32.mrb[56].mxu1  ;;  %3284 = vmatprep.mubr.f32.mxu0 %v2861_v49 }
 0x2b9   :  { %v3891_v15 = vadd.f32 %v2737_v63, %v5436_v29  ;;  %v2739_v54 = vpop.f32.mrb[57].mxu1 }
 0x2ba   :  { %v3892_v23 = vadd.f32 %v2739_v54, %v5439_v16  ;;  %v2741_v24 = vpop.f32.mrb[58].mxu1 }
 0x2bb   :  { %v2743_v40 = vpop.f32.mrb[59].mxu1  ;;  %3285 = vmatmul.mubr.f32.gmra.mrb[54].mxu0 %v2860_v41  ;;  %v2864_v48 = vmax.f32 %v3891_v15, 0.0  ;;  %v3893_v45 = vadd.f32 %v2741_v24, %v5436_v29 }
 0x2bc   :  { %v2865_v22 = vmax.f32 %v3892_v23, 0.0  ;;  %v3894_v2 = vadd.f32 %v2743_v40, %v5439_v16 }
 0x2bd   :  { %v2868_v21 = vmax.f32 %v3893_v45, 0.0 }
 0x2be   :  { %v2869_v0 = vmax.f32 %v3894_v2, 0.0  ;;  %3289 = vmatprep.mubr.f32.mxu0 %v2865_v22 }
 0x2bf   :  { %3290 = vmatmul.mubr.f32.gmra.mrb[56].mxu0 %v2864_v48 }
 0x2c0   :  { %v2747_v26 = vpop.f32.mrb[60].mxu1  ;;  %3294 = vmatprep.mubr.f32.mxu0 %v2869_v0 }
 0x2c1   :  { %v3895_v42 = vadd.f32 %v2747_v26, %v5436_v29  ;;  %v2749_v50 = vpop.f32.mrb[61].mxu1 }
 0x2c2   :  { %v3896_v31 = vadd.f32 %v2749_v50, %v5439_v16  ;;  %v2751_v5 = vpop.f32.mrb[62].mxu1 }
 0x2c3   :  { %v2753_v43 = vpop.f32.mrb[63].mxu1  ;;  %3295 = vmatmul.mubr.f32.gmra.mrb[58].mxu0 %v2868_v21  ;;  %v2872_v33 = vmax.f32 %v3895_v42, 0.0  ;;  %v3897_v35 = vadd.f32 %v2751_v5, %v5436_v29 }
 0x2c4   :  { %v2873_v27 = vmax.f32 %v3896_v31, 0.0  ;;  %v3898_v56 = vadd.f32 %v2753_v43, %v5439_v16 }
 0x2c5   :  { %v2876_v39 = vmax.f32 %v3897_v35, 0.0 }
 0x2c6   :  { %v2877_v55 = vmax.f32 %v3898_v56, 0.0  ;;  %3299 = vmatprep.mubr.f32.mxu0 %v2873_v27 }
 0x2c7   :  { %3300 = vmatmul.mubr.f32.gmra.mrb[60].mxu0 %v2872_v33 }
 0x2c8   :  { %v2757_v59 = vpop.f32.mrb[64].mxu1  ;;  %3304 = vmatprep.mubr.f32.mxu0 %v2877_v55 }
 0x2c9   :  { %v3899_v38 = vadd.f32 %v2757_v59, %v5436_v29  ;;  %v2759_v12 = vpop.f32.mrb[65].mxu1 }
 0x2ca   :  { %v3900_v10 = vadd.f32 %v2759_v12, %v5439_v16  ;;  %v2761_v9 = vpop.f32.mrb[66].mxu1 }
 0x2cb   :  { %v2763_v61 = vpop.f32.mrb[67].mxu1  ;;  %3305 = vmatmul.mubr.f32.gmra.mrb[62].mxu0 %v2876_v39  ;;  %v2880_v47 = vmax.f32 %v3899_v38, 0.0  ;;  %v3901_v46 = vadd.f32 %v2761_v9, %v5436_v29 }
 0x2cc   :  { %v2881_v34 = vmax.f32 %v3900_v10, 0.0  ;;  %v3902_v58 = vadd.f32 %v2763_v61, %v5439_v16 }
 0x2cd   :  { %v2884_v36 = vmax.f32 %v3901_v46, 0.0 }
 0x2ce   :  { %v2885_v53 = vmax.f32 %v3902_v58, 0.0  ;;  %3309 = vmatprep.mubr.f32.mxu0 %v2881_v34 }
 0x2cf   :  { %3310 = vmatmul.mubr.f32.gmra.mrb[64].mxu0 %v2880_v47 }
 0x2d0   :  { %v2767_v18 = vpop.f32.mrb[68].mxu1  ;;  %3314 = vmatprep.mubr.f32.mxu0 %v2885_v53 }
 0x2d1   :  { %v3903_v20 = vadd.f32 %v2767_v18, %v5436_v29  ;;  %v2769_v60 = vpop.f32.mrb[69].mxu1 }
 0x2d2   :  { %v3904_v13 = vadd.f32 %v2769_v60, %v5439_v16  ;;  %v2771_v32 = vpop.f32.mrb[70].mxu1 }
 0x2d3   :  { %v2773_v7 = vpop.f32.mrb[71].mxu1  ;;  %3315 = vmatmul.mubr.f32.gmra.mrb[66].mxu0 %v2884_v36  ;;  %v2888_v1 = vmax.f32 %v3903_v20, 0.0  ;;  %v3905_v44 = vadd.f32 %v2771_v32, %v5436_v29 }
 0x2d4   :  { %v2889_v25 = vmax.f32 %v3904_v13, 0.0  ;;  %v3906_v62 = vadd.f32 %v2773_v7, %v5439_v16 }
 0x2d5   :  { %v2892_v52 = vmax.f32 %v3905_v44, 0.0 }
 0x2d6   :  { %v2893_v8 = vmax.f32 %v3906_v62, 0.0  ;;  %3319 = vmatprep.mubr.f32.mxu0 %v2889_v25 }
 0x2d7   :  { %3320 = vmatmul.mubr.f32.gmra.mrb[68].mxu0 %v2888_v1 }
 0x2d8   :  { %v2777_v30 = vpop.f32.mrb[72].mxu1  ;;  %3324 = vmatprep.mubr.f32.mxu0 %v2893_v8 }
 0x2d9   :  { %v3907_v3 = vadd.f32 %v2777_v30, %v5436_v29  ;;  %v2779_v28 = vpop.f32.mrb[73].mxu1 }
 0x2da   :  { %v3908_v6 = vadd.f32 %v2779_v28, %v5439_v16  ;;  %v2781_v17 = vpop.f32.mrb[74].mxu1 }
 0x2db   :  { %v2783_v14 = vpop.f32.mrb[75].mxu1  ;;  %3325 = vmatmul.mubr.f32.gmra.mrb[70].mxu0 %v2892_v52  ;;  %v2896_v4 = vmax.f32 %v3907_v3, 0.0  ;;  %v3909_v57 = vadd.f32 %v2781_v17, %v5436_v29 }
 0x2dc   :  { %v2897_v51 = vmax.f32 %v3908_v6, 0.0  ;;  %v3910_v37 = vadd.f32 %v2783_v14, %v5439_v16 }
 0x2dd   :  { %v2900_v49 = vmax.f32 %v3909_v57, 0.0 }
 0x2de   :  { %v2901_v11 = vmax.f32 %v3910_v37, 0.0  ;;  %3329 = vmatprep.mubr.f32.mxu0 %v2897_v51 }
 0x2df   :  { %3330 = vmatmul.mubr.f32.gmra.mrb[72].mxu0 %v2896_v4 }
 0x2e0   :  { %v2787_v19 = vpop.f32.mrb[76].mxu1  ;;  %3334 = vmatprep.mubr.f32.mxu0 %v2901_v11 }
 0x2e1   :  { %v3911_v63 = vadd.f32 %v2787_v19, %v5436_v29  ;;  %v2789_v41 = vpop.f32.mrb[77].mxu1 }
 0x2e2   :  { %v3912_v15 = vadd.f32 %v2789_v41, %v5439_v16  ;;  %v2791_v54 = vpop.f32.mrb[78].mxu1 }
 0x2e3   :  { %v2793_v23 = vpop.f32.mrb[79].mxu1  ;;  %3335 = vmatmul.mubr.f32.gmra.mrb[74].mxu0 %v2900_v49  ;;  %v2904_v22 = vmax.f32 %v3911_v63, 0.0  ;;  %v3913_v2 = vadd.f32 %v2791_v54, %v5436_v29 }
 0x2e4   :  { %v2905_v24 = vmax.f32 %v3912_v15, 0.0  ;;  %v3914_v40 = vadd.f32 %v2793_v23, %v5439_v16 }
 0x2e5   :  { %v2908_v0 = vmax.f32 %v3913_v2, 0.0 }
 0x2e6   :  { %v2909_v48 = vmax.f32 %v3914_v40, 0.0  ;;  %3339 = vmatprep.mubr.f32.mxu0 %v2905_v24 }
 0x2e7   :  { %3340 = vmatmul.mubr.f32.gmra.mrb[76].mxu0 %v2904_v22 }
 0x2e8   :  { %v2797_v45 = vpop.f32.mrb[80].mxu1  ;;  %3344 = vmatprep.mubr.f32.mxu0 %v2909_v48 }
 0x2e9   :  { %v3915_v26 = vadd.f32 %v2797_v45, %v5436_v29  ;;  %v2799_v21 = vpop.f32.mrb[81].mxu1 }
 0x2ea   :  { %v3916_v42 = vadd.f32 %v2799_v21, %v5439_v16  ;;  %v2801_v50 = vpop.f32.mrb[82].mxu1 }
 0x2eb   :  { %v2803_v31 = vpop.f32.mrb[83].mxu1  ;;  %3345 = vmatmul.mubr.f32.gmra.mrb[78].mxu0 %v2908_v0  ;;  %v2912_v27 = vmax.f32 %v3915_v26, 0.0  ;;  %v3917_v56 = vadd.f32 %v2801_v50, %v5436_v29 }
 0x2ec   :  { %v2913_v5 = vmax.f32 %v3916_v42, 0.0  ;;  %v3918_v43 = vadd.f32 %v2803_v31, %v5439_v16 }
 0x2ed   :  { %v2916_v55 = vmax.f32 %v3917_v56, 0.0 }
 0x2ee   :  { %v2917_v33 = vmax.f32 %v3918_v43, 0.0  ;;  %3349 = vmatprep.mubr.f32.mxu0 %v2913_v5 }
 0x2ef   :  { %3350 = vmatmul.mubr.f32.gmra.mrb[80].mxu0 %v2912_v27 }
 0x2f0   :  { %v2807_v35 = vpop.f32.mrb[84].mxu1  ;;  %3354 = vmatprep.mubr.f32.mxu0 %v2917_v33 }
 0x2f1   :  { %v3919_v59 = vadd.f32 %v2807_v35, %v5436_v29  ;;  %v2809_v39 = vpop.f32.mrb[85].mxu1 }
 0x2f2   :  { %v3920_v38 = vadd.f32 %v2809_v39, %v5439_v16  ;;  %v2811_v12 = vpop.f32.mrb[86].mxu1 }
 0x2f3   :  { %v2813_v10 = vpop.f32.mrb[87].mxu1  ;;  %3355 = vmatmul.mubr.f32.gmra.mrb[82].mxu0 %v2916_v55  ;;  %v2920_v34 = vmax.f32 %v3919_v59, 0.0  ;;  %v3921_v58 = vadd.f32 %v2811_v12, %v5436_v29  ;;  %v5506_v12 = vld [vmem:[%s5618_s4] ss:$0 sm:$0xff] }
 0x2f4   :  { %v2921_v9 = vmax.f32 %v3920_v38, 0.0  ;;  %v3922_v61 = vadd.f32 %v2813_v10, %v5439_v16 }
 0x2f5   :  { %v2924_v53 = vmax.f32 %v3921_v58, 0.0 }
 0x2f6   :  { %v2925_v47 = vmax.f32 %v3922_v61, 0.0  ;;  %3359 = vmatprep.mubr.f32.mxu0 %v2921_v9 }
 0x2f7   :  { %3360 = vmatmul.mubr.f32.gmra.mrb[84].mxu0 %v2920_v34 }
 0x2f8   :  { %v2817_v46 = vpop.f32.mrb[88].mxu1  ;;  %3364 = vmatprep.mubr.f32.mxu0 %v2925_v47 }
 0x2f9   :  { %v3923_v18 = vadd.f32 %v2817_v46, %v5436_v29  ;;  %v2819_v36 = vpop.f32.mrb[89].mxu1 }
 0x2fa   :  { %v3924_v20 = vadd.f32 %v2819_v36, %v5439_v16  ;;  %v2821_v60 = vpop.f32.mrb[90].mxu1 }
 0x2fb   :  { %v2823_v13 = vpop.f32.mrb[91].mxu1  ;;  %3365 = vmatmul.mubr.f32.gmra.mrb[86].mxu0 %v2924_v53  ;;  %v2928_v25 = vmax.f32 %v3923_v18, 0.0  ;;  %v3925_v62 = vadd.f32 %v2821_v60, %v5436_v29 }
 0x2fc   :  { %v2929_v32 = vmax.f32 %v3924_v20, 0.0  ;;  %v3926_v7 = vadd.f32 %v2823_v13, %v5439_v16 }
 0x2fd   :  { %v2932_v8 = vmax.f32 %v3925_v62, 0.0 }
 0x2fe   :  { %v2933_v1 = vmax.f32 %v3926_v7, 0.0  ;;  %3369 = vmatprep.mubr.f32.mxu0 %v2929_v32 }
 0x2ff   :  { %3370 = vmatmul.mubr.f32.gmra.mrb[88].mxu0 %v2928_v25 }
 0x300   :  { %v2827_v44 = vpop.f32.mrb[92].mxu1  ;;  %3374 = vmatprep.mubr.f32.mxu0 %v2933_v1 }
 0x301   :  { %v3927_v30 = vadd.f32 %v2827_v44, %v5436_v29  ;;  %v2829_v52 = vpop.f32.mrb[93].mxu1 }
 0x302   :  { %v3928_v3 = vadd.f32 %v2829_v52, %v5439_v16  ;;  %v2831_v28 = vpop.f32.mrb[94].mxu1 }
 0x303   :  { %v2833_v6 = vpop.f32.mrb[95].mxu1  ;;  %3375 = vmatmul.mubr.f32.gmra.mrb[90].mxu0 %v2932_v8  ;;  %v2936_v51 = vmax.f32 %v3927_v30, 0.0  ;;  %v3929_v37 = vadd.f32 %v2831_v28, %v5436_v29 }
 0x304   :  { %v2937_v17 = vmax.f32 %v3928_v3, 0.0  ;;  %v3930_v14 = vadd.f32 %v2833_v6, %v5439_v16 }
 0x305   :  { %v2940_v11 = vmax.f32 %v3929_v37, 0.0 }
 0x306   :  { %v2941_v4 = vmax.f32 %v3930_v14, 0.0  ;;  %3379 = vmatprep.mubr.f32.mxu0 %v2937_v17 }
 0x307   :  { %3380 = vmatmul.mubr.f32.gmra.mrb[92].mxu0 %v2936_v51 }
 0x308   :  { %v2837_v57 = vpop.f32.mrb[96].mxu1  ;;  %3384 = vmatprep.mubr.f32.mxu0 %v2941_v4 }
 0x309   :  { %v3931_v19 = vadd.f32 %v2837_v57, %v5436_v29  ;;  %v2839_v49 = vpop.f32.mrb[97].mxu1 }
 0x30a   :  { %v3932_v63 = vadd.f32 %v2839_v49, %v5439_v16  ;;  %v2841_v41 = vpop.f32.mrb[98].mxu1 }
 0x30b   :  { %v2843_v15 = vpop.f32.mrb[99].mxu1  ;;  %3385 = vmatmul.mubr.f32.gmra.mrb[94].mxu0 %v2940_v11  ;;  %v2944_v24 = vmax.f32 %v3931_v19, 0.0  ;;  %v3933_v40 = vadd.f32 %v2841_v41, %v5436_v29 }
 0x30c   :  { %v2945_v54 = vmax.f32 %v3932_v63, 0.0  ;;  %v3934_v23 = vadd.f32 %v2843_v15, %v5439_v16 }
 0x30d   :  { %v2948_v48 = vmax.f32 %v3933_v40, 0.0 }
 0x30e   :  { %v2949_v22 = vmax.f32 %v3934_v23, 0.0  ;;  %3389 = vmatprep.mubr.f32.mxu0 %v2945_v54 }
 0x30f   :  { %3390 = vmatmul.mubr.f32.gmra.mrb[96].mxu0 %v2944_v24 }
 0x310   :  { %v2847_v2 = vpop.f32.mrb[100].mxu1  ;;  %3394 = vmatprep.mubr.f32.mxu0 %v2949_v22 }
 0x311   :  { %v3935_v45 = vadd.f32 %v2847_v2, %v5436_v29  ;;  %v2849_v0 = vpop.f32.mrb[101].mxu1 }
 0x312   :  { %v3936_v26 = vadd.f32 %v2849_v0, %v5439_v16  ;;  %v2851_v21 = vpop.f32.mrb[102].mxu1 }
 0x313   :  { %v2852_v42 = vpop.f32.mrb[103].mxu1  ;;  %3395 = vmatmul.mubr.f32.gmra.mrb[98].mxu0 %v2948_v48  ;;  %v2952_v31 = vmax.f32 %v3935_v45, 0.0 }
 0x314   :  { %v2953_v50 = vmax.f32 %v3936_v26, 0.0 }
 0x316   :  { %3399 = vmatprep.mubr.f32.mxu0 %v2953_v50 }
 0x317   :  { %3400 = vmatmul.mubr.f32.gmra.mrb[100].mxu0 %v2952_v31 }
 0x341   :  { %v5491_v5 = vpop.f32.mrb[104].mxu1 }
 0x342   :  { %v3188_v43 = vpop.f32.mrb[105].mxu1 }
 0x347   :  { %v5493_v27 = vpop.f32.mrb[106].mxu1 }
 0x348   :  { %v3193_v56 = vpop.f32.mrb[107].mxu1 }
 0x34b   :  { %v5495_v33 = vpop.f32.mrb[108].mxu1 }
 0x34c   :  { %v3198_v35 = vpop.f32.mrb[109].mxu1 }
 0x34f   :  { %v5497_v29 = vpop.f32.mrb[110].mxu1 }
 0x350   :  { %v3203_v55 = vpop.f32.mrb[111].mxu1 }
 0x353   :  { %v5499_v16 = vpop.f32.mrb[112].mxu1 }
 0x354   :  { %v3208_v59 = vpop.f32.mrb[113].mxu1 }
 0x357   :  { %v5501_v39 = vpop.f32.mrb[114].mxu1 }
 0x358   :  { %v3213_v38 = vpop.f32.mrb[115].mxu1 }
 0x38a   :  { %v3281_v10 = vpop.f32.mrb[52].mxu0 }
 0x38b   :  { %v3937_v9 = vadd.f32 %v5506_v12, %v3281_v10  ;;  %v3283_v61 = vpop.f32.mrb[53].mxu0  ;;  %v3187_v10 = vadd.f32 %v5506_v12, %v5491_v5  ;;  %v3197_v5 = vadd.f32 %v5506_v12, %v5495_v33  ;;  %v3207_v33 = vadd.f32 %v5506_v12, %v5499_v16 }
 0x38d   :  { %3405 = vst [vmem:[%s5619_s5] sm:$0xff] %v3937_v9 }
 0x38e   :  { %v3286_v34 = vpop.f32.mrb[54].mxu0 }
 0x38f   :  { %v3938_v58 = vadd.f32 %v5506_v12, %v3286_v34  ;;  %v3288_v47 = vpop.f32.mrb[55].mxu0 }
 0x391   :  { %3406 = vst [vmem:[%s5619_s5 + $0x8] sm:$0xff] %v3938_v58  ;;  %v3192_v58 = vadd.f32 %v5506_v12, %v5493_v27  ;;  %v3202_v27 = vadd.f32 %v5506_v12, %v5497_v29  ;;  %v3212_v29 = vadd.f32 %v5506_v12, %v5501_v39 }
 0x392   :  { %v3291_v46 = vpop.f32.mrb[56].mxu0 }
 0x393   :  { %v3939_v53 = vadd.f32 %v5506_v12, %v3291_v46  ;;  %v3293_v18 = vpop.f32.mrb[57].mxu0 }
 0x395   :  { %3407 = vst [vmem:[%s5619_s5 + $0x10] sm:$0xff] %v3939_v53 }
 0x396   :  { %v3296_v36 = vpop.f32.mrb[58].mxu0 }
 0x397   :  { %v3940_v20 = vadd.f32 %v5506_v12, %v3296_v36  ;;  %v3298_v60 = vpop.f32.mrb[59].mxu0 }
 0x399   :  { %3408 = vst [vmem:[%s5619_s5 + $0x18] sm:$0xff] %v3940_v20 }
 0x39a   :  { %v3301_v13 = vpop.f32.mrb[60].mxu0 }
 0x39b   :  { %v3941_v32 = vadd.f32 %v5506_v12, %v3301_v13  ;;  %v3303_v7 = vpop.f32.mrb[61].mxu0 }
 0x39d   :  { %3409 = vst [vmem:[%s5619_s5 + $0x20] sm:$0xff] %v3941_v32 }
 0x39e   :  { %v3306_v25 = vpop.f32.mrb[62].mxu0 }
 0x39f   :  { %v3942_v62 = vadd.f32 %v5506_v12, %v3306_v25  ;;  %v3308_v1 = vpop.f32.mrb[63].mxu0 }
 0x3a1   :  { %3410 = vst [vmem:[%s5619_s5 + $0x28] sm:$0xff] %v3942_v62 }
 0x3a2   :  { %v3311_v44 = vpop.f32.mrb[64].mxu0 }
 0x3a3   :  { %v3943_v8 = vadd.f32 %v5506_v12, %v3311_v44  ;;  %v3313_v30 = vpop.f32.mrb[65].mxu0 }
 0x3a5   :  { %3411 = vst [vmem:[%s5619_s5 + $0x30] sm:$0xff] %v3943_v8 }
 0x3a6   :  { %v3316_v52 = vpop.f32.mrb[66].mxu0 }
 0x3a7   :  { %v3944_v3 = vadd.f32 %v5506_v12, %v3316_v52  ;;  %v3318_v28 = vpop.f32.mrb[67].mxu0 }
 0x3a9   :  { %3412 = vst [vmem:[%s5619_s5 + $0x38] sm:$0xff] %v3944_v3 }
 0x3aa   :  { %v3321_v6 = vpop.f32.mrb[68].mxu0 }
 0x3ab   :  { %v3945_v17 = vadd.f32 %v5506_v12, %v3321_v6  ;;  %v3323_v14 = vpop.f32.mrb[69].mxu0 }
 0x3ad   :  { %3413 = vst [vmem:[%s5619_s5 + $0x40] sm:$0xff] %v3945_v17 }
 0x3ae   :  { %v3326_v51 = vpop.f32.mrb[70].mxu0 }
 0x3af   :  { %v3946_v37 = vadd.f32 %v5506_v12, %v3326_v51  ;;  %v3328_v4 = vpop.f32.mrb[71].mxu0 }
 0x3b1   :  { %3414 = vst [vmem:[%s5619_s5 + $0x48] sm:$0xff] %v3946_v37 }
 0x3b2   :  { %v3331_v57 = vpop.f32.mrb[72].mxu0 }
 0x3b3   :  { %v3947_v11 = vadd.f32 %v5506_v12, %v3331_v57  ;;  %v3333_v19 = vpop.f32.mrb[73].mxu0 }
 0x3b5   :  { %3415 = vst [vmem:[%s5619_s5 + $0x50] sm:$0xff] %v3947_v11 }
 0x3b6   :  { %v3336_v49 = vpop.f32.mrb[74].mxu0 }
 0x3b7   :  { %v3948_v63 = vadd.f32 %v5506_v12, %v3336_v49  ;;  %v3338_v41 = vpop.f32.mrb[75].mxu0 }
 0x3b9   :  { %3416 = vst [vmem:[%s5619_s5 + $0x58] sm:$0xff] %v3948_v63 }
 0x3ba   :  { %v3341_v15 = vpop.f32.mrb[76].mxu0 }
 0x3bb   :  { %v3949_v54 = vadd.f32 %v5506_v12, %v3341_v15  ;;  %v3343_v23 = vpop.f32.mrb[77].mxu0 }
 0x3bd   :  { %3417 = vst [vmem:[%s5619_s5 + $0x60] sm:$0xff] %v3949_v54 }
 0x3be   :  { %v3346_v24 = vpop.f32.mrb[78].mxu0 }
 0x3bf   :  { %v3950_v40 = vadd.f32 %v5506_v12, %v3346_v24  ;;  %v3348_v22 = vpop.f32.mrb[79].mxu0 }
 0x3c1   :  { %3418 = vst [vmem:[%s5619_s5 + $0x68] sm:$0xff] %v3950_v40 }
 0x3c2   :  { %v3351_v2 = vpop.f32.mrb[80].mxu0 }
 0x3c3   :  { %v3951_v48 = vadd.f32 %v5506_v12, %v3351_v2  ;;  %v3353_v45 = vpop.f32.mrb[81].mxu0 }
 0x3c5   :  { %3419 = vst [vmem:[%s5619_s5 + $0x70] sm:$0xff] %v3951_v48 }
 0x3c6   :  { %v3356_v0 = vpop.f32.mrb[82].mxu0 }
 0x3c7   :  { %v3952_v26 = vadd.f32 %v5506_v12, %v3356_v0  ;;  %v3358_v21 = vpop.f32.mrb[83].mxu0 }
 0x3c9   :  { %3420 = vst [vmem:[%s5619_s5 + $0x78] sm:$0xff] %v3952_v26 }
 0x3ca   :  { %v3361_v42 = vpop.f32.mrb[84].mxu0 }
 0x3cb   :  { %v3953_v50 = vadd.f32 %v5506_v12, %v3361_v42  ;;  %v3363_v31 = vpop.f32.mrb[85].mxu0 }
 0x3cd   :  { %3421 = vst [vmem:[%s5619_s5 + $0x80] sm:$0xff] %v3953_v50 }
 0x3ce   :  { %v3366_v43 = vpop.f32.mrb[86].mxu0 }
 0x3cf   :  { %v3954_v56 = vadd.f32 %v5506_v12, %v3366_v43  ;;  %v3368_v35 = vpop.f32.mrb[87].mxu0 }
 0x3d1   :  { %3422 = vst [vmem:[%s5619_s5 + $0x88] sm:$0xff] %v3954_v56 }
 0x3d2   :  { %v3371_v55 = vpop.f32.mrb[88].mxu0 }
 0x3d3   :  { %v3955_v59 = vadd.f32 %v5506_v12, %v3371_v55  ;;  %v3373_v38 = vpop.f32.mrb[89].mxu0 }
 0x3d5   :  { %3423 = vst [vmem:[%s5619_s5 + $0x90] sm:$0xff] %v3955_v59 }
 0x3d6   :  { %v3376_v9 = vpop.f32.mrb[90].mxu0 }
 0x3d7   :  { %v3377_v61 = vadd.f32 %v3376_v9, %v3187_v10  ;;  %v3378_v34 = vpop.f32.mrb[91].mxu0 }
 0x3d9   :  { %3424 = vst [vmem:[%s5619_s5 + $0x98] sm:$0xff] %v3377_v61 }
 0x3da   :  { %v3381_v47 = vpop.f32.mrb[92].mxu0 }
 0x3db   :  { %v3382_v46 = vadd.f32 %v3381_v47, %v3192_v58  ;;  %v3383_v53 = vpop.f32.mrb[93].mxu0 }
 0x3dd   :  { %3425 = vst [vmem:[%s5619_s5 + $0xa0] sm:$0xff] %v3382_v46 }
 0x3de   :  { %v3386_v18 = vpop.f32.mrb[94].mxu0 }
 0x3df   :  { %v3387_v36 = vadd.f32 %v3386_v18, %v3197_v5  ;;  %v3388_v20 = vpop.f32.mrb[95].mxu0 }
 0x3e1   :  { %3426 = vst [vmem:[%s5619_s5 + $0xa8] sm:$0xff] %v3387_v36 }
 0x3e2   :  { %v3391_v60 = vpop.f32.mrb[96].mxu0 }
 0x3e3   :  { %v3392_v13 = vadd.f32 %v3391_v60, %v3202_v27  ;;  %v3393_v32 = vpop.f32.mrb[97].mxu0 }
 0x3e5   :  { %3427 = vst [vmem:[%s5619_s5 + $0xb0] sm:$0xff] %v3392_v13 }
 0x3e6   :  { %v3396_v7 = vpop.f32.mrb[98].mxu0 }
 0x3e7   :  { %v3397_v25 = vadd.f32 %v3396_v7, %v3207_v33  ;;  %v3398_v62 = vpop.f32.mrb[99].mxu0 }
 0x3e9   :  { %3428 = vst [vmem:[%s5619_s5 + $0xb8] sm:$0xff] %v3397_v25 }
 0x3ea   :  { %v3401_v1 = vpop.f32.mrb[100].mxu0 }
 0x3eb   :  { %v3402_v44 = vadd.f32 %v3401_v1, %v3212_v29  ;;  %v3403_v8 = vpop.f32.mrb[101].mxu0 }
 0x3ed   :  { %3429 = vst [vmem:[%s5619_s5 + $0xc0] sm:$0xff] %v3402_v44 }
 0x3ee   :  { %3434 = vsyncpa [#allocation3], 1 }
 0x3ef   :  { %3435 = vsyncpa [#allocation5], 1 }

</bundles_post_ra>
